<compile_context>
chip_gen: v7x
topology: tpu7x:2x2x1
jax: 0.10.0
libtpu: 0.0.40
codegen_flags: <defaults>
</compile_context>

<pallas_src>
import math
from functools import partial

import jax
import jax.numpy as jnp
from jax.experimental import pallas as pl
from jax.experimental.pallas import tpu as pltpu


# 48 MiB scoped VMEM: fits v7x (64 MiB physical) with headroom; v5e/v6e have
# 128 MiB physical so this only lifts their small scoped defaults (16/32 MiB).
VMEM_LIMIT_BYTES = 48 * 1024 * 1024
EMB_LN_ROW_TILE = 512          # ~85% of HBM roofline per measured tile sweep
NUM_CLASS_PAD = 128            # lane-dense classifier output width


# ---------------------------------------------------------------------------
# In-kernel math helpers
# ---------------------------------------------------------------------------

def _gelu_tanh(x):
    # TODO(synk): HF BERT uses exact erf-GELU; tanh approximation used here.
    c = math.sqrt(2.0 / math.pi)
    return 0.5 * x * (1.0 + jnp.tanh(c * (x + 0.044715 * x * x * x)))


def _layernorm(x, g, b):
    mu = jnp.mean(x, axis=-1, keepdims=True)
    var = jnp.mean((x - mu) ** 2, axis=-1, keepdims=True)
    return (x - mu) * jax.lax.rsqrt(var + 1e-12) * g + b


# ---------------------------------------------------------------------------
# Pallas kernels
# ---------------------------------------------------------------------------

def _emb_layernorm_kernel(x_ref, g_ref, b_ref, o_ref):
    o_ref[...] = _layernorm(x_ref[...], g_ref[...], b_ref[...])


def _encoder_layer_kernel(x_ref, mask_ref,
                          wqkv_ref, bqkv_ref, wo_ref, bo_ref,
                          ln1g_ref, ln1b_ref,
                          wi_ref, bi_ref, wf_ref, bf_ref,
                          ln2g_ref, ln2b_ref,
                          o_ref, ctx_ref, *, nh, dh):
    """One full BERT encoder layer for one batch element, resident in VMEM."""
    H = nh * dh
    x = x_ref[0]                              # (S, H) f32
    bias = mask_ref[0]                        # (1, S) additive attention-mask bias

    # ---- fused QKV projection: one MXU pass, bf16 operands, f32 accumulation.
    #      1/sqrt(dh) is pre-folded into the Q columns of wqkv/bqkv at init.  ----
    qkv = jnp.dot(x.astype(jnp.bfloat16), wqkv_ref[...],
                  preferred_element_type=jnp.float32) + bqkv_ref[...]

    # ---- per-head attention; each head's context goes into a lane-contiguous
    #      (S, H) VMEM slab so the output projection is a single K=H matmul. ----
    # TODO(synk): at BERT-base scale (nh=12, S=512) convert this static unroll to
    # lax.fori_loop with pl.ds head slices to bound per-head (S,S) live ranges,
    # and add a second "parallel" grid axis over S tiles for the FFN/LN portion.
    for h in range(nh):
        lo = h * dh
        qh = qkv[:, lo:lo + dh].astype(jnp.bfloat16)
        kh = qkv[:, H + lo:H + lo + dh].astype(jnp.bfloat16)
        vh = qkv[:, 2 * H + lo:2 * H + lo + dh].astype(jnp.bfloat16)
        # q . k^T via dot_general contracting last dims (no materialized transpose)
        s = jax.lax.dot_general(qh, kh, (((1,), (1,)), ((), ())),
                                preferred_element_type=jnp.float32) + bias
        m = jnp.max(s, axis=-1, keepdims=True)
        p = jnp.exp(s - m)
        inv = pl.reciprocal(jnp.sum(p, axis=-1, keepdims=True), approx=True)
        p = (p * inv).astype(jnp.bfloat16)
        ctx_ref[:, lo:lo + dh] = jnp.dot(p, vh, preferred_element_type=jnp.float32)

    # ---- single full-width output projection: (S,H)@(H,H) fills the MXU depth ----
    attn = jnp.dot(ctx_ref[...].astype(jnp.bfloat16), wo_ref[...],
                   preferred_element_type=jnp.float32) + bo_ref[...]

    # ---- add & LayerNorm 1 ----
    h1 = _layernorm(attn + x, ln1g_ref[...], ln1b_ref[...])

    # ---- feed-forward with GELU (f32 VPU math: v5e-safe) ----
    inter = jnp.dot(h1.astype(jnp.bfloat16), wi_ref[...],
                    preferred_element_type=jnp.float32) + bi_ref[...]
    inter = _gelu_tanh(inter)
    ffn = jnp.dot(inter.astype(jnp.bfloat16), wf_ref[...],
                  preferred_element_type=jnp.float32) + bf_ref[...]

    # ---- add & LayerNorm 2 ----
    o_ref[0] = _layernorm(ffn + h1, ln2g_ref[...], ln2b_ref[...])


def _pool_cls_kernel(cls_ref, pw_ref, pb_ref, cw_ref, cb_ref, o_ref):
    """Fused pooler (tanh on [CLS]) + classifier head (lane-padded output)."""
    pooled = jnp.tanh(jnp.dot(cls_ref[...].astype(jnp.bfloat16), pw_ref[...],
                              preferred_element_type=jnp.float32) + pb_ref[...])
    o_ref[...] = jnp.dot(pooled.astype(jnp.bfloat16), cw_ref[...],
                         preferred_element_type=jnp.float32) + cb_ref[...]


# ---------------------------------------------------------------------------
# Kernel wrappers
# ---------------------------------------------------------------------------

def emb_layernorm(x2, g, b):
    """Row-tiled LayerNorm over the last dim of a [M, H] slab (no residual)."""
    rows, H = x2.shape
    r = rows if rows <= EMB_LN_ROW_TILE else EMB_LN_ROW_TILE
    return pl.pallas_call(
        _emb_layernorm_kernel,
        out_shape=jax.ShapeDtypeStruct((rows, H), jnp.float32),
        grid=(pl.cdiv(rows, r),),
        in_specs=[
            pl.BlockSpec((r, H), lambda i: (i, 0)),
            pl.BlockSpec((1, H), lambda i: (0, 0), pipeline_mode=pl.Buffered(1)),
            pl.BlockSpec((1, H), lambda i: (0, 0), pipeline_mode=pl.Buffered(1)),
        ],
        out_specs=pl.BlockSpec((r, H), lambda i: (i, 0)),
        compiler_params=pltpu.CompilerParams(
            dimension_semantics=("parallel",),
            vmem_limit_bytes=VMEM_LIMIT_BYTES),
    )(x2, g, b)


def encoder_layer(x, mask_bias, lp, *, nh, dh):
    """x: [B, S, H]; mask_bias: [B, 1, S]; one fused pallas_call per layer."""
    B, S, H = x.shape
    I = lp["wi"].shape[1]

    def _const(shape):
        n = len(shape)
        # Constant across the batch grid -> single VMEM buffer (no double-buffer).
        return pl.BlockSpec(shape, lambda b, _n=n: (0,) * _n,
                            pipeline_mode=pl.Buffered(1))

    return pl.pallas_call(
        partial(_encoder_layer_kernel, nh=nh, dh=dh),
        out_shape=jax.ShapeDtypeStruct((B, S, H), jnp.float32),
        grid=(B,),
        in_specs=[
            pl.BlockSpec((1, S, H), lambda b: (b, 0, 0)),          # x
            pl.BlockSpec((1, 1, S), lambda b: (b, 0, 0)),          # mask bias
            _const((H, 3 * H)), _const((1, 3 * H)),                # wqkv, bqkv
            _const((H, H)), _const((1, H)),                        # wo, bo
            _const((1, H)), _const((1, H)),                        # ln1 g/b
            _const((H, I)), _const((1, I)),                        # wi, bi
            _const((I, H)), _const((1, H)),                        # wf, bf
            _const((1, H)), _const((1, H)),                        # ln2 g/b
        ],
        out_specs=pl.BlockSpec((1, S, H), lambda b: (b, 0, 0)),
        scratch_shapes=[pltpu.VMEM((S, H), jnp.float32)],          # per-head ctx slab
        compiler_params=pltpu.CompilerParams(
            dimension_semantics=("parallel",),
            vmem_limit_bytes=VMEM_LIMIT_BYTES),
    )(x, mask_bias,
      lp["wqkv"], lp["bqkv"], lp["wo"], lp["bo"],
      lp["ln1_g"], lp["ln1_b"], lp["wi"], lp["bi"], lp["wf"], lp["bf"],
      lp["ln2_g"], lp["ln2_b"])


def pool_classify(cls_tok, pw, pb, cw, cb):
    """cls_tok: [B, H] -> lane-padded logits [B, NUM_CLASS_PAD]."""
    B, H = cls_tok.shape
    N = cw.shape[1]
    return pl.pallas_call(
        _pool_cls_kernel,
        out_shape=jax.ShapeDtypeStruct((B, N), jnp.float32),
        in_specs=[
            pl.BlockSpec((B, H), lambda: (0, 0)),
            pl.BlockSpec((H, H), lambda: (0, 0)),
            pl.BlockSpec((1, H), lambda: (0, 0)),
            pl.BlockSpec((H, N), lambda: (0, 0)),
            pl.BlockSpec((1, N), lambda: (0, 0)),
        ],
        out_specs=pl.BlockSpec((B, N), lambda: (0, 0)),
        compiler_params=pltpu.CompilerParams(vmem_limit_bytes=VMEM_LIMIT_BYTES),
    )(cls_tok, pw, pb, cw, cb)


# ---------------------------------------------------------------------------
# Synthetic BERT-for-sequence-classification parameters (deterministic init)
# ---------------------------------------------------------------------------

CFG = dict(vocab=100, max_pos=16, type_vocab=2, hidden=32, heads=4,
           intermediate=64, layers=2, n_classes=3)


def init_params(key, cfg):
    H, I, C = cfg["hidden"], cfg["intermediate"], cfg["n_classes"]
    nh, dh = cfg["heads"], cfg["hidden"] // cfg["heads"]
    std = 0.02
    scale = 1.0 / math.sqrt(dh)

    def nrm(k, shape):
        return std * jax.random.normal(k, shape, dtype=jnp.float32)

    keys = iter(jax.random.split(key, 64))
    cls_w = nrm(next(keys), (H, C))
    params = dict(
        word_emb=nrm(next(keys), (cfg["vocab"], H)),
        pos_emb=nrm(next(keys), (cfg["max_pos"], H)),
        type_emb=nrm(next(keys), (cfg["type_vocab"], H)),
        emb_ln_g=jnp.ones((1, H), jnp.float32),
        emb_ln_b=jnp.zeros((1, H), jnp.float32),
        pool_w=nrm(next(keys), (H, H)).astype(jnp.bfloat16),
        pool_b=jnp.zeros((1, H), jnp.float32),
        cls_w=jnp.zeros((H, NUM_CLASS_PAD), jnp.float32)
              .at[:, :C].set(cls_w).astype(jnp.bfloat16),
        cls_b=jnp.zeros((1, NUM_CLASS_PAD), jnp.float32),
        layers=[],
    )
    for _ in range(cfg["layers"]):
        wq = nrm(next(keys), (H, H))
        wk = nrm(next(keys), (H, H))
        wv = nrm(next(keys), (H, H))
        wo = nrm(next(keys), (H, H))
        bq = jnp.zeros((1, H), jnp.float32)
        params["layers"].append(dict(
            # 1/sqrt(dh) folded into the Q columns (one-time init cost, not hot path)
            wqkv=jnp.concatenate([wq * scale, wk, wv], axis=1).astype(jnp.bfloat16),
            bqkv=jnp.concatenate([bq * scale, jnp.zeros((1, 2 * H), jnp.float32)],
                                 axis=1),
            wo=wo.astype(jnp.bfloat16),                 # full (H, H): one MXU pass
            bo=jnp.zeros((1, H), jnp.float32),
            ln1_g=jnp.ones((1, H), jnp.float32),
            ln1_b=jnp.zeros((1, H), jnp.float32),
            wi=nrm(next(keys), (H, I)).astype(jnp.bfloat16),
            bi=jnp.zeros((1, I), jnp.float32),
            wf=nrm(next(keys), (I, H)).astype(jnp.bfloat16),
            bf=jnp.zeros((1, H), jnp.float32),
            ln2_g=jnp.ones((1, H), jnp.float32),
            ln2_b=jnp.zeros((1, H), jnp.float32),
        ))
    return params


# ---------------------------------------------------------------------------
# Forward pass (mirrors BertForSequenceClassification in eval mode)
# ---------------------------------------------------------------------------

def bert_sentiment_forward(params, input_ids, attention_mask, cfg=CFG):
    B, S = input_ids.shape
    H = cfg["hidden"]
    nh, dh = cfg["heads"], H // cfg["heads"]

    # --- embeddings (gather = plain-JAX glue) + row-tiled LayerNorm kernel ---
    x = (jnp.take(params["word_emb"], input_ids, axis=0)
         + params["pos_emb"][:S][None, :, :]
         + params["type_emb"][0][None, None, :])                 # token_type_ids = 0
    x2 = emb_layernorm(x.reshape(B * S, H).astype(jnp.float32),
                       params["emb_ln_g"], params["emb_ln_b"])
    x = x2.reshape(B, S, H)
    # dropout: eval mode -> identity

    # extended attention mask: (1 - mask) * -10000, shape [B, 1, S]
    mask_bias = ((1.0 - attention_mask.astype(jnp.float32)) * -10000.0
                 ).reshape(B, 1, S)

    # --- encoder: one fused pallas_call per layer, batch-parallel grid ---
    # TODO(synk): on v5e, prefetch layer L+1 weights during layer L via the
    # cross-call semaphore-future pattern to hide the per-layer weight DMA.
    for lp in params["layers"]:
        x = encoder_layer(x, mask_bias, lp, nh=nh, dh=dh)

    # --- pooler (tanh on [CLS]) + classifier head, fused; dropout -> identity ---
    cls_tok = x[:, 0, :]
    logits_pad = pool_classify(cls_tok, params["pool_w"], params["pool_b"],
                               params["cls_w"], params["cls_b"])
    return logits_pad[:, :cfg["n_classes"]]


# ---------------------------------------------------------------------------

if __name__ == "__main__":
    key = jax.random.PRNGKey(0)
    k_param, k_ids = jax.random.split(key)

    B, S = 2, 8
    params = init_params(k_param, CFG)

    input_ids = jax.random.randint(k_ids, (B, S), 0, CFG["vocab"], dtype=jnp.int32)
    attention_mask = jnp.array([[1, 1, 1, 1, 1, 1, 1, 1],
                                [1, 1, 1, 1, 1, 0, 0, 0]], dtype=jnp.int32)

    logits = jax.jit(bert_sentiment_forward)(params, input_ids, attention_mask)
    logits = jax.block_until_ready(logits)

    assert logits.shape == (B, CFG["n_classes"])
    assert bool(jnp.all(jnp.isfinite(logits)))
    print("KERNEL_OK")
</pallas_src>

<mosaic_0001>
module attributes {stable_mosaic.version = 11 : i64} {
  func.func @_emb_layernorm_kernel(%arg0: i32, %arg1: memref<16x32xf32, #tpu.memory_space<vmem>>, %arg2: memref<1x32xf32, #tpu.memory_space<vmem>>, %arg3: memref<1x32xf32, #tpu.memory_space<vmem>>, %arg4: memref<16x32xf32, #tpu.memory_space<vmem>>) attributes {dimension_semantics = [#tpu.dimension_semantics<parallel>], iteration_bounds = array<i64: 1>, scalar_prefetch = 0 : i64, scratch_operands = 0 : i64, tpu.core_type = #tpu.core_type<tc>, window_params = [{transform_indices = @transform_0, window_bounds = array<i64: 16, 32>}, {pipeline_mode = #tpu.pipeline_mode<synchronous>, transform_indices = @transform_1, window_bounds = array<i64: 1, 32>}, {pipeline_mode = #tpu.pipeline_mode<synchronous>, transform_indices = @transform_2, window_bounds = array<i64: 1, 32>}, {transform_indices = @transform_3, window_bounds = array<i64: 16, 32>}]} {
    %c0 = arith.constant 0 : index
    %c0_0 = arith.constant 0 : index
    %0 = vector.load %arg1[%c0, %c0_0] : memref<16x32xf32, #tpu.memory_space<vmem>>, vector<16x32xf32>
    %c0_1 = arith.constant 0 : index
    %c0_2 = arith.constant 0 : index
    %1 = vector.load %arg2[%c0_1, %c0_2] : memref<1x32xf32, #tpu.memory_space<vmem>>, vector<1x32xf32>
    %c0_3 = arith.constant 0 : index
    %c0_4 = arith.constant 0 : index
    %2 = vector.load %arg3[%c0_3, %c0_4] : memref<1x32xf32, #tpu.memory_space<vmem>>, vector<1x32xf32>
    %cst = arith.constant dense<0.000000e+00> : vector<16xf32>
    %3 = vector.multi_reduction <add>, %0, %cst [1] : vector<16x32xf32> to vector<16xf32>
    %4 = vector.shape_cast %3 : vector<16xf32> to vector<16x1xf32>
    %cst_5 = arith.constant 3.200000e+01 : f32
    %5 = vector.broadcast %cst_5 : f32 to vector<16x1xf32>
    %6 = arith.divf %4, %5 : vector<16x1xf32>
    %7 = vector.broadcast %6 : vector<16x1xf32> to vector<16x32xf32>
    %8 = arith.subf %0, %7 : vector<16x32xf32>
    %9 = arith.mulf %8, %8 : vector<16x32xf32>
    %cst_6 = arith.constant dense<0.000000e+00> : vector<16xf32>
    %10 = vector.multi_reduction <add>, %9, %cst_6 [1] : vector<16x32xf32> to vector<16xf32>
    %11 = vector.shape_cast %10 : vector<16xf32> to vector<16x1xf32>
    %cst_7 = arith.constant 3.200000e+01 : f32
    %12 = vector.broadcast %cst_7 : f32 to vector<16x1xf32>
    %13 = arith.divf %11, %12 : vector<16x1xf32>
    %14 = vector.broadcast %6 : vector<16x1xf32> to vector<16x32xf32>
    %15 = arith.subf %0, %14 : vector<16x32xf32>
    %cst_8 = arith.constant 9.99999996E-13 : f32
    %16 = vector.broadcast %cst_8 : f32 to vector<16x1xf32>
    %17 = arith.addf %13, %16 : vector<16x1xf32>
    %18 = math.rsqrt %17 : vector<16x1xf32>
    %19 = vector.broadcast %18 : vector<16x1xf32> to vector<16x32xf32>
    %20 = arith.mulf %15, %19 : vector<16x32xf32>
    %21 = vector.broadcast %1 : vector<1x32xf32> to vector<16x32xf32>
    %22 = arith.mulf %20, %21 : vector<16x32xf32>
    %23 = vector.broadcast %2 : vector<1x32xf32> to vector<16x32xf32>
    %24 = arith.addf %22, %23 : vector<16x32xf32>
    %c0_9 = arith.constant 0 : index
    %c0_10 = arith.constant 0 : index
    %25 = vector.load %arg4[%c0_9, %c0_10] : memref<16x32xf32, #tpu.memory_space<vmem>>, vector<16x32xf32>
    tpu.vector_store %arg4[%c0_9, %c0_10], %24 {strides = array<i32>} : memref<16x32xf32, #tpu.memory_space<vmem>>, vector<16x32xf32>,
    return
  }
  func.func @transform_0(%arg0: i32) -> (i32, i32) {
    %c0_i32 = arith.constant 0 : i32
    %c0_i32_0 = arith.constant 0 : i32
    return %arg0, %c0_i32 : i32, i32
  }
  func.func @transform_1(%arg0: i32) -> (i32, i32) {
    %c0_i32 = arith.constant 0 : i32
    %c0_i32_0 = arith.constant 0 : i32
    %c0_i32_1 = arith.constant 0 : i32
    return %c0_i32, %c0_i32_0 : i32, i32
  }
  func.func @transform_2(%arg0: i32) -> (i32, i32) {
    %c0_i32 = arith.constant 0 : i32
    %c0_i32_0 = arith.constant 0 : i32
    %c0_i32_1 = arith.constant 0 : i32
    return %c0_i32, %c0_i32_0 : i32, i32
  }
  func.func @transform_3(%arg0: i32) -> (i32, i32) {
    %c0_i32 = arith.constant 0 : i32
    %c0_i32_0 = arith.constant 0 : i32
    return %arg0, %c0_i32 : i32, i32
  }
}

module attributes {stable_mosaic.version = 11 : i64} {
  func.func @_pool_cls_kernel(%arg0: memref<2x32xf32, #tpu.memory_space<vmem>>, %arg1: memref<32x32xbf16, #tpu.memory_space<vmem>>, %arg2: memref<1x32xf32, #tpu.memory_space<vmem>>, %arg3: memref<32x128xbf16, #tpu.memory_space<vmem>>, %arg4: memref<1x128xf32, #tpu.memory_space<vmem>>, %arg5: memref<2x128xf32, #tpu.memory_space<vmem>>) attributes {dimension_semantics = [], scalar_prefetch = 0 : i64, scratch_operands = 0 : i64, tpu.core_type = #tpu.core_type<tc>} {
    %c0 = arith.constant 0 : index
    %c0_0 = arith.constant 0 : index
    %0 = vector.load %arg0[%c0, %c0_0] : memref<2x32xf32, #tpu.memory_space<vmem>>, vector<2x32xf32>
    %1 = arith.truncf %0 : vector<2x32xf32> to vector<2x32xbf16>
    %c0_1 = arith.constant 0 : index
    %c0_2 = arith.constant 0 : index
    %2 = vector.load %arg1[%c0_1, %c0_2] : memref<32x32xbf16, #tpu.memory_space<vmem>>, vector<32x32xbf16>
    %cst = arith.constant dense<0.000000e+00> : vector<2x32xf32>
    %3 = tpu.matmul %1, %2, %cst {dimension_numbers = #tpu.dot_dimension_numbers<[1], [0], [0], [1], [0, 0, 1, 1], [], []>} : vector<2x32xbf16>, vector<32x32xbf16>, vector<2x32xf32> -> vector<2x32xf32>
    %c0_3 = arith.constant 0 : index
    %c0_4 = arith.constant 0 : index
    %4 = vector.load %arg2[%c0_3, %c0_4] : memref<1x32xf32, #tpu.memory_space<vmem>>, vector<1x32xf32>
    %5 = vector.broadcast %4 : vector<1x32xf32> to vector<2x32xf32>
    %6 = arith.addf %3, %5 : vector<2x32xf32>
    %7 = math.tanh %6 : vector<2x32xf32>
    %8 = arith.truncf %7 : vector<2x32xf32> to vector<2x32xbf16>
    %c0_5 = arith.constant 0 : index
    %c0_6 = arith.constant 0 : index
    %9 = vector.load %arg3[%c0_5, %c0_6] : memref<32x128xbf16, #tpu.memory_space<vmem>>, vector<32x128xbf16>
    %cst_7 = arith.constant dense<0.000000e+00> : vector<2x128xf32>
    %10 = tpu.matmul %8, %9, %cst_7 {dimension_numbers = #tpu.dot_dimension_numbers<[1], [0], [0], [1], [0, 0, 1, 1], [], []>} : vector<2x32xbf16>, vector<32x128xbf16>, vector<2x128xf32> -> vector<2x128xf32>
    %c0_8 = arith.constant 0 : index
    %c0_9 = arith.constant 0 : index
    %11 = vector.load %arg4[%c0_8, %c0_9] : memref<1x128xf32, #tpu.memory_space<vmem>>, vector<1x128xf32>
    %12 = vector.broadcast %11 : vector<1x128xf32> to vector<2x128xf32>
    %13 = arith.addf %10, %12 : vector<2x128xf32>
    %c0_10 = arith.constant 0 : index
    %c0_11 = arith.constant 0 : index
    %14 = vector.load %arg5[%c0_10, %c0_11] : memref<2x128xf32, #tpu.memory_space<vmem>>, vector<2x128xf32>
    tpu.vector_store %arg5[%c0_10, %c0_11], %13 {strides = array<i32>} : memref<2x128xf32, #tpu.memory_space<vmem>>, vector<2x128xf32>,
    return
  }
}

module attributes {stable_mosaic.version = 11 : i64} {
  func.func @_encoder_layer_kernel(%arg0: i32, %arg1: memref<1x8x32xf32, #tpu.memory_space<vmem>>, %arg2: memref<1x1x8xf32, #tpu.memory_space<vmem>>, %arg3: memref<32x96xbf16, #tpu.memory_space<vmem>>, %arg4: memref<1x96xf32, #tpu.memory_space<vmem>>, %arg5: memref<32x32xbf16, #tpu.memory_space<vmem>>, %arg6: memref<1x32xf32, #tpu.memory_space<vmem>>, %arg7: memref<1x32xf32, #tpu.memory_space<vmem>>, %arg8: memref<1x32xf32, #tpu.memory_space<vmem>>, %arg9: memref<32x64xbf16, #tpu.memory_space<vmem>>, %arg10: memref<1x64xf32, #tpu.memory_space<vmem>>, %arg11: memref<64x32xbf16, #tpu.memory_space<vmem>>, %arg12: memref<1x32xf32, #tpu.memory_space<vmem>>, %arg13: memref<1x32xf32, #tpu.memory_space<vmem>>, %arg14: memref<1x32xf32, #tpu.memory_space<vmem>>, %arg15: memref<1x8x32xf32, #tpu.memory_space<vmem>>, %arg16: memref<8x32xf32, #tpu.memory_space<vmem>>) attributes {dimension_semantics = [#tpu.dimension_semantics<parallel>], iteration_bounds = array<i64: 2>, scalar_prefetch = 0 : i64, scratch_operands = 1 : i64, tpu.core_type = #tpu.core_type<tc>, window_params = [{transform_indices = @transform_0, window_bounds = array<i64: 1, 8, 32>}, {transform_indices = @transform_1, window_bounds = array<i64: 1, 1, 8>}, {pipeline_mode = #tpu.pipeline_mode<synchronous>, transform_indices = @transform_2, window_bounds = array<i64: 32, 96>}, {pipeline_mode = #tpu.pipeline_mode<synchronous>, transform_indices = @transform_3, window_bounds = array<i64: 1, 96>}, {pipeline_mode = #tpu.pipeline_mode<synchronous>, transform_indices = @transform_4, window_bounds = array<i64: 32, 32>}, {pipeline_mode = #tpu.pipeline_mode<synchronous>, transform_indices = @transform_5, window_bounds = array<i64: 1, 32>}, {pipeline_mode = #tpu.pipeline_mode<synchronous>, transform_indices = @transform_6, window_bounds = array<i64: 1, 32>}, {pipeline_mode = #tpu.pipeline_mode<synchronous>, transform_indices = @transform_7, window_bounds = array<i64: 1, 32>}, {pipeline_mode = #tpu.pipeline_mode<synchronous>, transform_indices = @transform_8, window_bounds = array<i64: 32, 64>}, {pipeline_mode = #tpu.pipeline_mode<synchronous>, transform_indices = @transform_9, window_bounds = array<i64: 1, 64>}, {pipeline_mode = #tpu.pipeline_mode<synchronous>, transform_indices = @transform_10, window_bounds = array<i64: 64, 32>}, {pipeline_mode = #tpu.pipeline_mode<synchronous>, transform_indices = @transform_11, window_bounds = array<i64: 1, 32>}, {pipeline_mode = #tpu.pipeline_mode<synchronous>, transform_indices = @transform_12, window_bounds = array<i64: 1, 32>}, {pipeline_mode = #tpu.pipeline_mode<synchronous>, transform_indices = @transform_13, window_bounds = array<i64: 1, 32>}, {transform_indices = @transform_14, window_bounds = array<i64: 1, 8, 32>}]} {
    %c0 = arith.constant 0 : index
    %c0_0 = arith.constant 0 : index
    %c0_1 = arith.constant 0 : index
    %0 = vector.load %arg1[%c0, %c0_0, %c0_1] : memref<1x8x32xf32, #tpu.memory_space<vmem>>, vector<1x8x32xf32>
    %1 = vector.shape_cast %0 : vector<1x8x32xf32> to vector<8x32xf32>
    %c0_2 = arith.constant 0 : index
    %c0_3 = arith.constant 0 : index
    %c0_4 = arith.constant 0 : index
    %2 = vector.load %arg2[%c0_2, %c0_3, %c0_4] : memref<1x1x8xf32, #tpu.memory_space<vmem>>, vector<1x1x8xf32>
    %3 = vector.shape_cast %2 : vector<1x1x8xf32> to vector<1x8xf32>
    %4 = arith.truncf %1 : vector<8x32xf32> to vector<8x32xbf16>
    %c0_5 = arith.constant 0 : index
    %c0_6 = arith.constant 0 : index
    %5 = vector.load %arg3[%c0_5, %c0_6] : memref<32x96xbf16, #tpu.memory_space<vmem>>, vector<32x96xbf16>
    %cst = arith.constant dense<0.000000e+00> : vector<8x96xf32>
    %6 = tpu.matmul %4, %5, %cst {dimension_numbers = #tpu.dot_dimension_numbers<[1], [0], [0], [1], [0, 0, 1, 1], [], []>} : vector<8x32xbf16>, vector<32x96xbf16>, vector<8x96xf32> -> vector<8x96xf32>
    %c0_7 = arith.constant 0 : index
    %c0_8 = arith.constant 0 : index
    %7 = vector.load %arg4[%c0_7, %c0_8] : memref<1x96xf32, #tpu.memory_space<vmem>>, vector<1x96xf32>
    %8 = vector.broadcast %7 : vector<1x96xf32> to vector<8x96xf32>
    %9 = arith.addf %6, %8 : vector<8x96xf32>
    %10 = vector.extract_strided_slice %9 {offsets = [0, 0], sizes = [8, 8], strides = [1, 1]} : vector<8x96xf32> to vector<8x8xf32>
    %11 = arith.truncf %10 : vector<8x8xf32> to vector<8x8xbf16>
    %12 = vector.extract_strided_slice %9 {offsets = [0, 32], sizes = [8, 8], strides = [1, 1]} : vector<8x96xf32> to vector<8x8xf32>
    %13 = arith.truncf %12 : vector<8x8xf32> to vector<8x8xbf16>
    %14 = vector.extract_strided_slice %9 {offsets = [0, 64], sizes = [8, 8], strides = [1, 1]} : vector<8x96xf32> to vector<8x8xf32>
    %15 = arith.truncf %14 : vector<8x8xf32> to vector<8x8xbf16>
    %cst_9 = arith.constant dense<0.000000e+00> : vector<8x8xf32>
    %16 = tpu.matmul %11, %13, %cst_9 {dimension_numbers = #tpu.dot_dimension_numbers<[1], [1], [0], [0], [0, 0, 1, 0], [], []>} : vector<8x8xbf16>, vector<8x8xbf16>, vector<8x8xf32> -> vector<8x8xf32>
    %17 = vector.broadcast %3 : vector<1x8xf32> to vector<8x8xf32>
    %18 = arith.addf %16, %17 : vector<8x8xf32>
    %cst_10 = arith.constant dense<0xFF800000> : vector<8xf32>
    %19 = vector.multi_reduction <maximumf>, %18, %cst_10 [1] : vector<8x8xf32> to vector<8xf32>
    %20 = vector.shape_cast %19 : vector<8xf32> to vector<8x1xf32>
    %21 = vector.broadcast %20 : vector<8x1xf32> to vector<8x8xf32>
    %22 = arith.subf %18, %21 : vector<8x8xf32>
    %23 = math.exp %22 : vector<8x8xf32>
    %cst_11 = arith.constant dense<0.000000e+00> : vector<8xf32>
    %24 = vector.multi_reduction <add>, %23, %cst_11 [1] : vector<8x8xf32> to vector<8xf32>
    %25 = vector.shape_cast %24 : vector<8xf32> to vector<8x1xf32>
    %26 = tpu.reciprocal %25 {approx = true} : vector<8x1xf32> -> vector<8x1xf32>
    %27 = vector.broadcast %26 : vector<8x1xf32> to vector<8x8xf32>
    %28 = arith.mulf %23, %27 : vector<8x8xf32>
    %29 = arith.truncf %28 : vector<8x8xf32> to vector<8x8xbf16>
    %cst_12 = arith.constant dense<0.000000e+00> : vector<8x8xf32>
    %30 = tpu.matmul %29, %15, %cst_12 {dimension_numbers = #tpu.dot_dimension_numbers<[1], [0], [0], [1], [0, 0, 1, 1], [], []>} : vector<8x8xbf16>, vector<8x8xbf16>, vector<8x8xf32> -> vector<8x8xf32>
    %c0_13 = arith.constant 0 : index
    %c0_14 = arith.constant 0 : index
    %31 = vector.load %arg16[%c0_13, %c0_14] : memref<8x32xf32, #tpu.memory_space<vmem>>, vector<8x8xf32>
    tpu.vector_store %arg16[%c0_13, %c0_14], %30 {strides = array<i32>} : memref<8x32xf32, #tpu.memory_space<vmem>>, vector<8x8xf32>,
    %32 = vector.extract_strided_slice %9 {offsets = [0, 8], sizes = [8, 8], strides = [1, 1]} : vector<8x96xf32> to vector<8x8xf32>
    %33 = arith.truncf %32 : vector<8x8xf32> to vector<8x8xbf16>
    %34 = vector.extract_strided_slice %9 {offsets = [0, 40], sizes = [8, 8], strides = [1, 1]} : vector<8x96xf32> to vector<8x8xf32>
    %35 = arith.truncf %34 : vector<8x8xf32> to vector<8x8xbf16>
    %36 = vector.extract_strided_slice %9 {offsets = [0, 72], sizes = [8, 8], strides = [1, 1]} : vector<8x96xf32> to vector<8x8xf32>
    %37 = arith.truncf %36 : vector<8x8xf32> to vector<8x8xbf16>
    %cst_15 = arith.constant dense<0.000000e+00> : vector<8x8xf32>
    %38 = tpu.matmul %33, %35, %cst_15 {dimension_numbers = #tpu.dot_dimension_numbers<[1], [1], [0], [0], [0, 0, 1, 0], [], []>} : vector<8x8xbf16>, vector<8x8xbf16>, vector<8x8xf32> -> vector<8x8xf32>
    %39 = vector.broadcast %3 : vector<1x8xf32> to vector<8x8xf32>
    %40 = arith.addf %38, %39 : vector<8x8xf32>
    %cst_16 = arith.constant dense<0xFF800000> : vector<8xf32>
    %41 = vector.multi_reduction <maximumf>, %40, %cst_16 [1] : vector<8x8xf32> to vector<8xf32>
    %42 = vector.shape_cast %41 : vector<8xf32> to vector<8x1xf32>
    %43 = vector.broadcast %42 : vector<8x1xf32> to vector<8x8xf32>
    %44 = arith.subf %40, %43 : vector<8x8xf32>
    %45 = math.exp %44 : vector<8x8xf32>
    %cst_17 = arith.constant dense<0.000000e+00> : vector<8xf32>
    %46 = vector.multi_reduction <add>, %45, %cst_17 [1] : vector<8x8xf32> to vector<8xf32>
    %47 = vector.shape_cast %46 : vector<8xf32> to vector<8x1xf32>
    %48 = tpu.reciprocal %47 {approx = true} : vector<8x1xf32> -> vector<8x1xf32>
    %49 = vector.broadcast %48 : vector<8x1xf32> to vector<8x8xf32>
    %50 = arith.mulf %45, %49 : vector<8x8xf32>
    %51 = arith.truncf %50 : vector<8x8xf32> to vector<8x8xbf16>
    %cst_18 = arith.constant dense<0.000000e+00> : vector<8x8xf32>
    %52 = tpu.matmul %51, %37, %cst_18 {dimension_numbers = #tpu.dot_dimension_numbers<[1], [0], [0], [1], [0, 0, 1, 1], [], []>} : vector<8x8xbf16>, vector<8x8xbf16>, vector<8x8xf32> -> vector<8x8xf32>
    %c0_19 = arith.constant 0 : index
    %c8 = arith.constant 8 : index
    %53 = vector.load %arg16[%c0_19, %c8] : memref<8x32xf32, #tpu.memory_space<vmem>>, vector<8x8xf32>
    tpu.vector_store %arg16[%c0_19, %c8], %52 {strides = array<i32>} : memref<8x32xf32, #tpu.memory_space<vmem>>, vector<8x8xf32>,
    %54 = vector.extract_strided_slice %9 {offsets = [0, 16], sizes = [8, 8], strides = [1, 1]} : vector<8x96xf32> to vector<8x8xf32>
    %55 = arith.truncf %54 : vector<8x8xf32> to vector<8x8xbf16>
    %56 = vector.extract_strided_slice %9 {offsets = [0, 48], sizes = [8, 8], strides = [1, 1]} : vector<8x96xf32> to vector<8x8xf32>
    %57 = arith.truncf %56 : vector<8x8xf32> to vector<8x8xbf16>
    %58 = vector.extract_strided_slice %9 {offsets = [0, 80], sizes = [8, 8], strides = [1, 1]} : vector<8x96xf32> to vector<8x8xf32>
    %59 = arith.truncf %58 : vector<8x8xf32> to vector<8x8xbf16>
    %cst_20 = arith.constant dense<0.000000e+00> : vector<8x8xf32>
    %60 = tpu.matmul %55, %57, %cst_20 {dimension_numbers = #tpu.dot_dimension_numbers<[1], [1], [0], [0], [0, 0, 1, 0], [], []>} : vector<8x8xbf16>, vector<8x8xbf16>, vector<8x8xf32> -> vector<8x8xf32>
    %61 = vector.broadcast %3 : vector<1x8xf32> to vector<8x8xf32>
    %62 = arith.addf %60, %61 : vector<8x8xf32>
    %cst_21 = arith.constant dense<0xFF800000> : vector<8xf32>
    %63 = vector.multi_reduction <maximumf>, %62, %cst_21 [1] : vector<8x8xf32> to vector<8xf32>
    %64 = vector.shape_cast %63 : vector<8xf32> to vector<8x1xf32>
    %65 = vector.broadcast %64 : vector<8x1xf32> to vector<8x8xf32>
    %66 = arith.subf %62, %65 : vector<8x8xf32>
    %67 = math.exp %66 : vector<8x8xf32>
    %cst_22 = arith.constant dense<0.000000e+00> : vector<8xf32>
    %68 = vector.multi_reduction <add>, %67, %cst_22 [1] : vector<8x8xf32> to vector<8xf32>
    %69 = vector.shape_cast %68 : vector<8xf32> to vector<8x1xf32>
    %70 = tpu.reciprocal %69 {approx = true} : vector<8x1xf32> -> vector<8x1xf32>
    %71 = vector.broadcast %70 : vector<8x1xf32> to vector<8x8xf32>
    %72 = arith.mulf %67, %71 : vector<8x8xf32>
    %73 = arith.truncf %72 : vector<8x8xf32> to vector<8x8xbf16>
    %cst_23 = arith.constant dense<0.000000e+00> : vector<8x8xf32>
    %74 = tpu.matmul %73, %59, %cst_23 {dimension_numbers = #tpu.dot_dimension_numbers<[1], [0], [0], [1], [0, 0, 1, 1], [], []>} : vector<8x8xbf16>, vector<8x8xbf16>, vector<8x8xf32> -> vector<8x8xf32>
    %c0_24 = arith.constant 0 : index
    %c16 = arith.constant 16 : index
    %75 = vector.load %arg16[%c0_24, %c16] : memref<8x32xf32, #tpu.memory_space<vmem>>, vector<8x8xf32>
    tpu.vector_store %arg16[%c0_24, %c16], %74 {strides = array<i32>} : memref<8x32xf32, #tpu.memory_space<vmem>>, vector<8x8xf32>,
    %76 = vector.extract_strided_slice %9 {offsets = [0, 24], sizes = [8, 8], strides = [1, 1]} : vector<8x96xf32> to vector<8x8xf32>
    %77 = arith.truncf %76 : vector<8x8xf32> to vector<8x8xbf16>
    %78 = vector.extract_strided_slice %9 {offsets = [0, 56], sizes = [8, 8], strides = [1, 1]} : vector<8x96xf32> to vector<8x8xf32>
    %79 = arith.truncf %78 : vector<8x8xf32> to vector<8x8xbf16>
    %80 = vector.extract_strided_slice %9 {offsets = [0, 88], sizes = [8, 8], strides = [1, 1]} : vector<8x96xf32> to vector<8x8xf32>
    %81 = arith.truncf %80 : vector<8x8xf32> to vector<8x8xbf16>
    %cst_25 = arith.constant dense<0.000000e+00> : vector<8x8xf32>
    %82 = tpu.matmul %77, %79, %cst_25 {dimension_numbers = #tpu.dot_dimension_numbers<[1], [1], [0], [0], [0, 0, 1, 0], [], []>} : vector<8x8xbf16>, vector<8x8xbf16>, vector<8x8xf32> -> vector<8x8xf32>
    %83 = vector.broadcast %3 : vector<1x8xf32> to vector<8x8xf32>
    %84 = arith.addf %82, %83 : vector<8x8xf32>
    %cst_26 = arith.constant dense<0xFF800000> : vector<8xf32>
    %85 = vector.multi_reduction <maximumf>, %84, %cst_26 [1] : vector<8x8xf32> to vector<8xf32>
    %86 = vector.shape_cast %85 : vector<8xf32> to vector<8x1xf32>
    %87 = vector.broadcast %86 : vector<8x1xf32> to vector<8x8xf32>
    %88 = arith.subf %84, %87 : vector<8x8xf32>
    %89 = math.exp %88 : vector<8x8xf32>
    %cst_27 = arith.constant dense<0.000000e+00> : vector<8xf32>
    %90 = vector.multi_reduction <add>, %89, %cst_27 [1] : vector<8x8xf32> to vector<8xf32>
    %91 = vector.shape_cast %90 : vector<8xf32> to vector<8x1xf32>
    %92 = tpu.reciprocal %91 {approx = true} : vector<8x1xf32> -> vector<8x1xf32>
    %93 = vector.broadcast %92 : vector<8x1xf32> to vector<8x8xf32>
    %94 = arith.mulf %89, %93 : vector<8x8xf32>
    %95 = arith.truncf %94 : vector<8x8xf32> to vector<8x8xbf16>
    %cst_28 = arith.constant dense<0.000000e+00> : vector<8x8xf32>
    %96 = tpu.matmul %95, %81, %cst_28 {dimension_numbers = #tpu.dot_dimension_numbers<[1], [0], [0], [1], [0, 0, 1, 1], [], []>} : vector<8x8xbf16>, vector<8x8xbf16>, vector<8x8xf32> -> vector<8x8xf32>
    %c0_29 = arith.constant 0 : index
    %c24 = arith.constant 24 : index
    %97 = vector.load %arg16[%c0_29, %c24] : memref<8x32xf32, #tpu.memory_space<vmem>>, vector<8x8xf32>
    tpu.vector_store %arg16[%c0_29, %c24], %96 {strides = array<i32>} : memref<8x32xf32, #tpu.memory_space<vmem>>, vector<8x8xf32>,
    %c0_30 = arith.constant 0 : index
    %c0_31 = arith.constant 0 : index
    %98 = vector.load %arg16[%c0_30, %c0_31] : memref<8x32xf32, #tpu.memory_space<vmem>>, vector<8x32xf32>
    %99 = arith.truncf %98 : vector<8x32xf32> to vector<8x32xbf16>
    %c0_32 = arith.constant 0 : index
    %c0_33 = arith.constant 0 : index
    %100 = vector.load %arg5[%c0_32, %c0_33] : memref<32x32xbf16, #tpu.memory_space<vmem>>, vector<32x32xbf16>
    %cst_34 = arith.constant dense<0.000000e+00> : vector<8x32xf32>
    %101 = tpu.matmul %99, %100, %cst_34 {dimension_numbers = #tpu.dot_dimension_numbers<[1], [0], [0], [1], [0, 0, 1, 1], [], []>} : vector<8x32xbf16>, vector<32x32xbf16>, vector<8x32xf32> -> vector<8x32xf32>
    %c0_35 = arith.constant 0 : index
    %c0_36 = arith.constant 0 : index
    %102 = vector.load %arg6[%c0_35, %c0_36] : memref<1x32xf32, #tpu.memory_space<vmem>>, vector<1x32xf32>
    %103 = vector.broadcast %102 : vector<1x32xf32> to vector<8x32xf32>
    %104 = arith.addf %101, %103 : vector<8x32xf32>
    %105 = arith.addf %104, %1 : vector<8x32xf32>
    %c0_37 = arith.constant 0 : index
    %c0_38 = arith.constant 0 : index
    %106 = vector.load %arg7[%c0_37, %c0_38] : memref<1x32xf32, #tpu.memory_space<vmem>>, vector<1x32xf32>
    %c0_39 = arith.constant 0 : index
    %c0_40 = arith.constant 0 : index
    %107 = vector.load %arg8[%c0_39, %c0_40] : memref<1x32xf32, #tpu.memory_space<vmem>>, vector<1x32xf32>
    %cst_41 = arith.constant dense<0.000000e+00> : vector<8xf32>
    %108 = vector.multi_reduction <add>, %105, %cst_41 [1] : vector<8x32xf32> to vector<8xf32>
    %109 = vector.shape_cast %108 : vector<8xf32> to vector<8x1xf32>
    %cst_42 = arith.constant 3.200000e+01 : f32
    %110 = vector.broadcast %cst_42 : f32 to vector<8x1xf32>
    %111 = arith.divf %109, %110 : vector<8x1xf32>
    %112 = vector.broadcast %111 : vector<8x1xf32> to vector<8x32xf32>
    %113 = arith.subf %105, %112 : vector<8x32xf32>
    %114 = arith.mulf %113, %113 : vector<8x32xf32>
    %cst_43 = arith.constant dense<0.000000e+00> : vector<8xf32>
    %115 = vector.multi_reduction <add>, %114, %cst_43 [1] : vector<8x32xf32> to vector<8xf32>
    %116 = vector.shape_cast %115 : vector<8xf32> to vector<8x1xf32>
    %cst_44 = arith.constant 3.200000e+01 : f32
    %117 = vector.broadcast %cst_44 : f32 to vector<8x1xf32>
    %118 = arith.divf %116, %117 : vector<8x1xf32>
    %119 = vector.broadcast %111 : vector<8x1xf32> to vector<8x32xf32>
    %120 = arith.subf %105, %119 : vector<8x32xf32>
    %cst_45 = arith.constant 9.99999996E-13 : f32
    %121 = vector.broadcast %cst_45 : f32 to vector<8x1xf32>
    %122 = arith.addf %118, %121 : vector<8x1xf32>
    %123 = math.rsqrt %122 : vector<8x1xf32>
    %124 = vector.broadcast %123 : vector<8x1xf32> to vector<8x32xf32>
    %125 = arith.mulf %120, %124 : vector<8x32xf32>
    %126 = vector.broadcast %106 : vector<1x32xf32> to vector<8x32xf32>
    %127 = arith.mulf %125, %126 : vector<8x32xf32>
    %128 = vector.broadcast %107 : vector<1x32xf32> to vector<8x32xf32>
    %129 = arith.addf %127, %128 : vector<8x32xf32>
    %130 = arith.truncf %129 : vector<8x32xf32> to vector<8x32xbf16>
    %c0_46 = arith.constant 0 : index
    %c0_47 = arith.constant 0 : index
    %131 = vector.load %arg9[%c0_46, %c0_47] : memref<32x64xbf16, #tpu.memory_space<vmem>>, vector<32x64xbf16>
    %cst_48 = arith.constant dense<0.000000e+00> : vector<8x64xf32>
    %132 = tpu.matmul %130, %131, %cst_48 {dimension_numbers = #tpu.dot_dimension_numbers<[1], [0], [0], [1], [0, 0, 1, 1], [], []>} : vector<8x32xbf16>, vector<32x64xbf16>, vector<8x64xf32> -> vector<8x64xf32>
    %c0_49 = arith.constant 0 : index
    %c0_50 = arith.constant 0 : index
    %133 = vector.load %arg10[%c0_49, %c0_50] : memref<1x64xf32, #tpu.memory_space<vmem>>, vector<1x64xf32>
    %134 = vector.broadcast %133 : vector<1x64xf32> to vector<8x64xf32>
    %135 = arith.addf %132, %134 : vector<8x64xf32>
    %cst_51 = arith.constant 5.000000e-01 : f32
    %136 = vector.broadcast %cst_51 : f32 to vector<8x64xf32>
    %137 = arith.mulf %136, %135 : vector<8x64xf32>
    %cst_52 = arith.constant 4.471500e-02 : f32
    %138 = vector.broadcast %cst_52 : f32 to vector<8x64xf32>
    %139 = arith.mulf %138, %135 : vector<8x64xf32>
    %140 = arith.mulf %139, %135 : vector<8x64xf32>
    %141 = arith.mulf %140, %135 : vector<8x64xf32>
    %142 = arith.addf %135, %141 : vector<8x64xf32>
    %cst_53 = arith.constant 0.797884583 : f32
    %143 = vector.broadcast %cst_53 : f32 to vector<8x64xf32>
    %144 = arith.mulf %143, %142 : vector<8x64xf32>
    %145 = math.tanh %144 : vector<8x64xf32>
    %cst_54 = arith.constant 1.000000e+00 : f32
    %146 = vector.broadcast %cst_54 : f32 to vector<8x64xf32>
    %147 = arith.addf %146, %145 : vector<8x64xf32>
    %148 = arith.mulf %137, %147 : vector<8x64xf32>
    %149 = arith.truncf %148 : vector<8x64xf32> to vector<8x64xbf16>
    %c0_55 = arith.constant 0 : index
    %c0_56 = arith.constant 0 : index
    %150 = vector.load %arg11[%c0_55, %c0_56] : memref<64x32xbf16, #tpu.memory_space<vmem>>, vector<64x32xbf16>
    %cst_57 = arith.constant dense<0.000000e+00> : vector<8x32xf32>
    %151 = tpu.matmul %149, %150, %cst_57 {dimension_numbers = #tpu.dot_dimension_numbers<[1], [0], [0], [1], [0, 0, 1, 1], [], []>} : vector<8x64xbf16>, vector<64x32xbf16>, vector<8x32xf32> -> vector<8x32xf32>
    %c0_58 = arith.constant 0 : index
    %c0_59 = arith.constant 0 : index
    %152 = vector.load %arg12[%c0_58, %c0_59] : memref<1x32xf32, #tpu.memory_space<vmem>>, vector<1x32xf32>
    %153 = vector.broadcast %152 : vector<1x32xf32> to vector<8x32xf32>
    %154 = arith.addf %151, %153 : vector<8x32xf32>
    %155 = arith.addf %154, %129 : vector<8x32xf32>
    %c0_60 = arith.constant 0 : index
    %c0_61 = arith.constant 0 : index
    %156 = vector.load %arg13[%c0_60, %c0_61] : memref<1x32xf32, #tpu.memory_space<vmem>>, vector<1x32xf32>
    %c0_62 = arith.constant 0 : index
    %c0_63 = arith.constant 0 : index
    %157 = vector.load %arg14[%c0_62, %c0_63] : memref<1x32xf32, #tpu.memory_space<vmem>>, vector<1x32xf32>
    %cst_64 = arith.constant dense<0.000000e+00> : vector<8xf32>
    %158 = vector.multi_reduction <add>, %155, %cst_64 [1] : vector<8x32xf32> to vector<8xf32>
    %159 = vector.shape_cast %158 : vector<8xf32> to vector<8x1xf32>
    %cst_65 = arith.constant 3.200000e+01 : f32
    %160 = vector.broadcast %cst_65 : f32 to vector<8x1xf32>
    %161 = arith.divf %159, %160 : vector<8x1xf32>
    %162 = vector.broadcast %161 : vector<8x1xf32> to vector<8x32xf32>
    %163 = arith.subf %155, %162 : vector<8x32xf32>
    %164 = arith.mulf %163, %163 : vector<8x32xf32>
    %cst_66 = arith.constant dense<0.000000e+00> : vector<8xf32>
    %165 = vector.multi_reduction <add>, %164, %cst_66 [1] : vector<8x32xf32> to vector<8xf32>
    %166 = vector.shape_cast %165 : vector<8xf32> to vector<8x1xf32>
    %cst_67 = arith.constant 3.200000e+01 : f32
    %167 = vector.broadcast %cst_67 : f32 to vector<8x1xf32>
    %168 = arith.divf %166, %167 : vector<8x1xf32>
    %169 = vector.broadcast %161 : vector<8x1xf32> to vector<8x32xf32>
    %170 = arith.subf %155, %169 : vector<8x32xf32>
    %cst_68 = arith.constant 9.99999996E-13 : f32
    %171 = vector.broadcast %cst_68 : f32 to vector<8x1xf32>
    %172 = arith.addf %168, %171 : vector<8x1xf32>
    %173 = math.rsqrt %172 : vector<8x1xf32>
    %174 = vector.broadcast %173 : vector<8x1xf32> to vector<8x32xf32>
    %175 = arith.mulf %170, %174 : vector<8x32xf32>
    %176 = vector.broadcast %156 : vector<1x32xf32> to vector<8x32xf32>
    %177 = arith.mulf %175, %176 : vector<8x32xf32>
    %178 = vector.broadcast %157 : vector<1x32xf32> to vector<8x32xf32>
    %179 = arith.addf %177, %178 : vector<8x32xf32>
    %c0_69 = arith.constant 0 : index
    %c0_70 = arith.constant 0 : index
    %c0_71 = arith.constant 0 : index
    %180 = vector.load %arg15[%c0_69, %c0_70, %c0_71] : memref<1x8x32xf32, #tpu.memory_space<vmem>>, vector<1x8x32xf32>
    %181 = vector.shape_cast %180 : vector<1x8x32xf32> to vector<8x32xf32>
    %182 = vector.shape_cast %179 : vector<8x32xf32> to vector<1x8x32xf32>
    tpu.vector_store %arg15[%c0_69, %c0_70, %c0_71], %182 {strides = array<i32>} : memref<1x8x32xf32, #tpu.memory_space<vmem>>, vector<1x8x32xf32>,
    return
  }
  func.func @transform_0(%arg0: i32) -> (i32, i32, i32) {
    %c0_i32 = arith.constant 0 : i32
    %c0_i32_0 = arith.constant 0 : i32
    %c0_i32_1 = arith.constant 0 : i32
    return %arg0, %c0_i32, %c0_i32_0 : i32, i32, i32
  }
  func.func @transform_1(%arg0: i32) -> (i32, i32, i32) {
    %c0_i32 = arith.constant 0 : i32
    %c0_i32_0 = arith.constant 0 : i32
    %c0_i32_1 = arith.constant 0 : i32
    return %arg0, %c0_i32, %c0_i32_0 : i32, i32, i32
  }
  func.func @transform_2(%arg0: i32) -> (i32, i32) {
    %c0_i32 = arith.constant 0 : i32
    %c0_i32_0 = arith.constant 0 : i32
    %c0_i32_1 = arith.constant 0 : i32
    return %c0_i32, %c0_i32_0 : i32, i32
  }
  func.func @transform_3(%arg0: i32) -> (i32, i32) {
    %c0_i32 = arith.constant 0 : i32
    %c0_i32_0 = arith.constant 0 : i32
    %c0_i32_1 = arith.constant 0 : i32
    return %c0_i32, %c0_i32_0 : i32, i32
  }
  func.func @transform_4(%arg0: i32) -> (i32, i32) {
    %c0_i32 = arith.constant 0 : i32
    %c0_i32_0 = arith.constant 0 : i32
    %c0_i32_1 = arith.constant 0 : i32
    return %c0_i32, %c0_i32_0 : i32, i32
  }
  func.func @transform_5(%arg0: i32) -> (i32, i32) {
    %c0_i32 = arith.constant 0 : i32
    %c0_i32_0 = arith.constant 0 : i32
    %c0_i32_1 = arith.constant 0 : i32
    return %c0_i32, %c0_i32_0 : i32, i32
  }
  func.func @transform_6(%arg0: i32) -> (i32, i32) {
    %c0_i32 = arith.constant 0 : i32
    %c0_i32_0 = arith.constant 0 : i32
    %c0_i32_1 = arith.constant 0 : i32
    return %c0_i32, %c0_i32_0 : i32, i32
  }
  func.func @transform_7(%arg0: i32) -> (i32, i32) {
    %c0_i32 = arith.constant 0 : i32
    %c0_i32_0 = arith.constant 0 : i32
    %c0_i32_1 = arith.constant 0 : i32
    return %c0_i32, %c0_i32_0 : i32, i32
  }
  func.func @transform_8(%arg0: i32) -> (i32, i32) {
    %c0_i32 = arith.constant 0 : i32
    %c0_i32_0 = arith.constant 0 : i32
    %c0_i32_1 = arith.constant 0 : i32
    return %c0_i32, %c0_i32_0 : i32, i32
  }
  func.func @transform_9(%arg0: i32) -> (i32, i32) {
    %c0_i32 = arith.constant 0 : i32
    %c0_i32_0 = arith.constant 0 : i32
    %c0_i32_1 = arith.constant 0 : i32
    return %c0_i32, %c0_i32_0 : i32, i32
  }
  func.func @transform_10(%arg0: i32) -> (i32, i32) {
    %c0_i32 = arith.constant 0 : i32
    %c0_i32_0 = arith.constant 0 : i32
    %c0_i32_1 = arith.constant 0 : i32
    return %c0_i32, %c0_i32_0 : i32, i32
  }
  func.func @transform_11(%arg0: i32) -> (i32, i32) {
    %c0_i32 = arith.constant 0 : i32
    %c0_i32_0 = arith.constant 0 : i32
    %c0_i32_1 = arith.constant 0 : i32
    return %c0_i32, %c0_i32_0 : i32, i32
  }
  func.func @transform_12(%arg0: i32) -> (i32, i32) {
    %c0_i32 = arith.constant 0 : i32
    %c0_i32_0 = arith.constant 0 : i32
    %c0_i32_1 = arith.constant 0 : i32
    return %c0_i32, %c0_i32_0 : i32, i32
  }
  func.func @transform_13(%arg0: i32) -> (i32, i32) {
    %c0_i32 = arith.constant 0 : i32
    %c0_i32_0 = arith.constant 0 : i32
    %c0_i32_1 = arith.constant 0 : i32
    return %c0_i32, %c0_i32_0 : i32, i32
  }
  func.func @transform_14(%arg0: i32) -> (i32, i32, i32) {
    %c0_i32 = arith.constant 0 : i32
    %c0_i32_0 = arith.constant 0 : i32
    %c0_i32_1 = arith.constant 0 : i32
    return %arg0, %c0_i32, %c0_i32_0 : i32, i32, i32
  }
}

</mosaic_0001>

<bundles_post_ra>
// kernel: bert_sentiment_forward.4
= control target key start
LH: loop header
LB: loop body
LE: loop exit
PB: predicated region body
PF: predicated region fallthrough
CT: control target
= control target key end

     0   :  { %vm18_vm0 = vcmask 261120   ;;  %s118_s0 = inlined_call_operand.vmem [shape: f32[16,32], index: 0, kind: input, shape index: {}]   ;;  %s119_s1 = inlined_call_operand.vmem [shape: f32[1,32], index: 1, kind: input, shape index: {}]   ;;  %s120_s2 = inlined_call_operand.vmem [shape: f32[1,32], index: 2, kind: input, shape index: {}]   ;;  %s121_s3 = inlined_call_operand.vmem [shape: f32[16,32], index: 3, kind: output, shape index: {}]  }
   0x1   :  { %v14_v0 = vld [vmem:[%s118_s0] sm:$0xff]  ;;  %v15_v1 = vld [vmem:[%s118_s0 + $0x8] sm:$0xff] }
   0x2   :  { %v19_v2 = vsel %vm18_vm0, %v14_v0, 0.0  ;;  %v22_v3 = vsel %vm18_vm0, %v15_v1, 0.0  ;;  %v68_v21 = vld [vmem:[%s119_s1] ss:$0 sm:$0xff] }
   0x3   :  { %20 = vadd.xlane.f32.xlu0 %v19_v2  ;;  %v69_v23 = vld [vmem:[%s120_s2] ss:$0 sm:$0xff] }
   0x7   :  { %23 = vadd.xlane.f32.xlu0 %v22_v3 }
  0x90   :  { %v21_v4 = vpop.xlane.xlu0 %20 }
  0x91   :  { %v26_v5 = vmul.f32 0.03125, %v21_v4 }
  0x93   :  { %v28_v6 = vsub.f32 %v14_v0, %v26_v5 }
  0x94   :  { %v24_v7 = vpop.xlane.xlu0 %23 }
  0x95   :  { %v27_v8 = vmul.f32 0.03125, %v24_v7  ;;  %v30_v9 = vmul.f32 %v28_v6, %v28_v6 }
  0x97   :  { %v29_v10 = vsub.f32 %v15_v1, %v27_v8  ;;  %v32_v11 = vsel %vm18_vm0, %v30_v9, 0.0 }
  0x98   :  { %33 = vadd.xlane.f32.xlu1 %v32_v11 }
  0x99   :  { %v31_v12 = vmul.f32 %v29_v10, %v29_v10 }
  0x9b   :  { %v35_v13 = vsel %vm18_vm0, %v31_v12, 0.0 }
  0x9c   :  { %36 = vadd.xlane.f32.xlu1 %v35_v13 }
 0x125   :  { %v34_v14 = vpop.xlane.xlu1 %33 }
 0x126   :  { %v38_v15 = vmul.f32 0.03125, %v34_v14 }
 0x128   :  { %v40_v16 = vadd.f32 1e-12, %v38_v15 }
 0x129   :  { %v37_v17 = vpop.xlane.xlu1 %36 }
 0x12a   :  { %70 = vrsqrt.f32 %v40_v16  ;;  %v39_v18 = vmul.f32 0.03125, %v37_v17 }
 0x12c   :  { %v41_v19 = vadd.f32 1e-12, %v39_v18 }
 0x12e   :  { %72 = vrsqrt.f32 %v41_v19 }
 0x134   :  { %v71_v20 = vpop.eup %70 }
 0x135   :  { %v44_v22 = vmul.f32 %v71_v20, %v28_v6 }
 0x137   :  { %v52_v24 = vmul.f32 %v68_v21, %v44_v22 }
 0x138   :  { %v73_v25 = vpop.eup %72 }
 0x139   :  { %v60_v26 = vadd.f32 %v69_v23, %v52_v24  ;;  %v45_v27 = vmul.f32 %v73_v25, %v29_v10 }
 0x13b   :  { %62 = vst.msk [vmem:[%s121_s3] sm:$0xff] %vm18_vm0, %v60_v26  ;;  %v53_v28 = vmul.f32 %v68_v21, %v45_v27 }
 0x13d   :  { %v61_v29 = vadd.f32 %v69_v23, %v53_v28 }
 0x13f   :  { %63 = vst.msk [vmem:[%s121_s3 + $0x8] sm:$0xff] %vm18_vm0, %v61_v29 }

// kernel: bert_sentiment_forward.7
= control target key start
LH: loop header
LB: loop body
LE: loop exit
PB: predicated region body
PF: predicated region fallthrough
CT: control target
= control target key end

     0   :  { %v237_v1 = vmov 0.0   ;;  %vm238_vm0 = vmmov 0   ;;  %s305_s0 = inlined_call_operand.vmem [shape: f32[2,32], index: 0, kind: input, shape index: {}]   ;;  %s306_s1 = inlined_call_operand.vmem [shape: bf16[32,32], index: 1, kind: input, shape index: {}]   ;;  %s307_s2 = inlined_call_operand.vmem [shape: f32[1,32], index: 2, kind: input, shape index: {}]   ;;  %s308_s3 = inlined_call_operand.vmem [shape: bf16[32,128], index: 3, kind: input, shape index: {}]   ;;  %s309_s4 = inlined_call_operand.vmem [shape: f32[1,128], index: 4, kind: input, shape index: {}]   ;;  %s310_s5 = inlined_call_operand.hbm [shape: f32[2,128], index: 5, kind: output, shape index: {}]  }
   0x1   :  { %v207_v0 = vld [vmem:[%s306_s1] sm:$0xff]   ;;  %188 = vmatprep.subr.bf16.mxu0 %v237_v1  ;;  %196 = vmatprep.subr.bf16.mxu1 %v237_v1  ;;  %v208_v2 = vld [vmem:[%s306_s1 + $0x8] sm:$0xff]  }
   0x2   :  { %189 = vmatpush3.bf16.msra.mxu0 %v207_v0  ;;  %192 = vmatprep.mubr.msk.bf16.mxu0 %vm238_vm0, %v237_v1  ;;  %v22_v3 = vld [vmem:[%s305_s0] sm:$0x3] }
   0x3   :  { %190 = vmatprep.subr.bf16.mxu0 %v237_v1  ;;  %200 = vmatprep.mubr.msk.bf16.mxu1 %vm238_vm0, %v237_v1 }
   0x4   :  { %10 = vsyncpa [#allocation3], 0  ;;  %v23_v4 = vpack.c.bf16 %v22_v3, %v22_v3  ;;  %vm47_vm1 = vcmask 261120   ;;  %v209_v5 = vld [vmem:[%s308_s3] sm:$0xff]   ;;  %v210_v6 = vld [vmem:[%s308_s3 + $0x8] sm:$0xff]   ;;  %s239_s3 = smov [#allocation2]  }
   0x5   :  { %197 = vmatpush3.bf16.msra.mxu1 %v209_v5  ;;  %v174_v7 = vld [vmem:[%s307_s2] ss:$0 sm:$0xff]  ;;  %s166_s30 = sshll.u32 %s239_s3, 4  ;;  %s167_s30 = int_to_ptr.vmem [resolvable:$true] %s166_s30 }
   0x6   :  { %191 = vmatpush3.bf16.msra.mxu0 %v208_v2  ;;  %198 = vmatprep.subr.bf16.mxu1 %v237_v1  ;;  %v178_v15 = vld [vmem:[%s309_s4] ss:$0 sm:$0xff]  ;;  %s213_s2 = scalar_lea.vmem %s167_s30, 32  ;;  %p218_p1 = scmp.lt.s32.totalorder %s167_s30, %s167_s30 }
   0x7   :  { %p214_p0 = scmp.ne.s32.totalorder %s167_s30, %s213_s2  ;;  %p219_p2 = scmp.lt.s32.totalorder %s213_s2, %s213_s2 }
   0x9   :  { %193 = vmatmul.mubr.msk.bf16.vlgmr.msra.gmra.mrb[0].mxu0 %vm47_vm1, %v23_v4  ;;  %199 = vmatpush3.bf16.msra.mxu1 %v210_v6  ;;  %p220_p3 = por %p219_p2, %p218_p1 }
   0xb   :  { %p221_p4 = pnand %p220_p3, %p214_p0 }
  0xdc   :  { %v85_v8 = vpop.f32.mrb[0].mxu0 }
  0xdd   :  { %v86_v9 = vadd.f32 %v174_v7, %v85_v8  ;;  %v194_v10 = vpop.f32.mrb[1].mxu0 }
  0xde   :  { %v88_v11 = vpop.f32.mrb[2].mxu0 }
  0xdf   :  { %211 = vtanh.f32 %v86_v9  ;;  %v195_v12 = vpop.f32.mrb[3].mxu0 }
  0xe9   :  { %v212_v13 = vpop.eup %211 }
  0xea   :  { %v92_v14 = vpack.c.bf16 %v212_v13, %v212_v13 }
  0xec   :  { %201 = vmatmul.mubr.msk.bf16.vlgmr.msra.gmra.mrb[0].mxu1 %vm47_vm1, %v92_v14 }
 0x1bf   :  { %v153_v16 = vpop.f32.mrb[0].mxu1 }
 0x1c0   :  { %v154_v17 = vadd.f32 %v178_v15, %v153_v16  ;;  %v202_v18 = vpop.f32.mrb[1].mxu1 }
 0x1c1   :  { %v156_v19 = vpop.f32.mrb[2].mxu1 }
 0x1c2   :  { %159 = vst [vmem:[#allocation2] sm:$0x3] %v154_v17  ;;  %v203_v20 = vpop.f32.mrb[3].mxu1 }
 0x1c3   :  { %224 = shalt.err (!%p221_p4)
}
 0x1c4   :  { %s225_s4 = scalar_lea.hbm %s310_s5, 32 }
 0x1c5   :  { %p226_p5 = scmp.ne.s32.totalorder %s310_s5, %s225_s4  ;;  %p229_p6 = scmp.lt.u32.totalorder %s225_s4, %s310_s5 }
 0x1c7   :  { %p231_p7 = pnand %p229_p6, %p226_p5 }
 0x1c9   :  { %234 = shalt.err (!%p231_p7)
}
 0x1ca   :  { %169 = dma.vmem_to_hbm [thread:$0]  %s167_s30, 32, %s310_s5, [#allocation3]  }
 0x1cb   :  { %235 = dma.done.wait [#allocation3], 32  }
 0x1cc   :  { %236 = vsyncadd [#allocation3], 4294967264 }
 0x1cd   :  { %173 = vsyncpa [#allocation3], 1 }

// kernel: bert_sentiment_forward.5
= control target key start
LH: loop header
LB: loop body
LE: loop exit
PB: predicated region body
PF: predicated region fallthrough
CT: control target
= control target key end

     0   :  { %s1676_s29 = smov 0   ;;  %s1852_s0 = inlined_call_operand.vmem [shape: f32[2,8,32], index: 0, kind: input, shape index: {}]   ;;  %s1853_s1 = inlined_call_operand.vmem [shape: f32[2,1,8], index: 1, kind: input, shape index: {}]   ;;  %s1854_s2 = inlined_call_operand.vmem [shape: bf16[32,96], index: 2, kind: input, shape index: {}]   ;;  %s1855_s3 = inlined_call_operand.vmem [shape: f32[1,96], index: 3, kind: input, shape index: {}]   ;;  %s1856_s4 = inlined_call_operand.vmem [shape: bf16[32,32], index: 4, kind: input, shape index: {}]   ;;  %s1857_s5 = inlined_call_operand.vmem [shape: f32[1,32], index: 5, kind: input, shape index: {}]   ;;  %s1858_s6 = inlined_call_operand.vmem [shape: f32[1,32], index: 6, kind: input, shape index: {}]   ;;  %s1859_s7 = inlined_call_operand.vmem [shape: f32[1,32], index: 7, kind: input, shape index: {}]   ;;  %s1860_s8 = inlined_call_operand.vmem [shape: bf16[32,64], index: 8, kind: input, shape index: {}]   ;;  %s1861_s9 = inlined_call_operand.vmem [shape: f32[1,64], index: 9, kind: input, shape index: {}]   ;;  %s1862_s10 = inlined_call_operand.vmem [shape: bf16[64,32], index: 10, kind: input, shape index: {}]   ;;  %s1863_s11 = inlined_call_operand.vmem [shape: f32[1,32], index: 11, kind: input, shape index: {}]   ;;  %s1864_s12 = inlined_call_operand.vmem [shape: f32[1,32], index: 12, kind: input, shape index: {}]   ;;  %s1865_s13 = inlined_call_operand.vmem [shape: f32[1,32], index: 13, kind: input, shape index: {}]   ;;  %s1866_s14 = inlined_call_operand.vmem [shape: f32[2,8,32], index: 14, kind: output, shape index: {}]  }
   0x1 LB: > { %s1367_s30 = sadd.s32 4294967295, %s1583_s29   ;;  %p1371_p0 = scmp.ge.s32.totalorder %s1583_s29, 1  ;;  %s1583_s29 = sphi %s1676_s29, %s24_s29  }
   0x2   : > { %p419_p1 = scmp.lt.s32.totalorder %s1583_s29, 3 }
   0x4   : > { %p420_p2 = pnand %p1371_p0, %p419_p1 }
   0x5   : > { %v1545_v0 = vld [vmem:[%s1854_s2] sm:$0xff] (!%p420_p2)   ;;  %v1585_v1 = vmov (!%p420_p2), 0.0   ;;  %v1546_v2 = vld [vmem:[%s1854_s2 + $0x8] sm:$0xff] (!%p420_p2)   ;;  %vm1586_vm0 = vmmov (!%p420_p2), 0   ;;  %p466_p3 = scmp.lt.s32.totalorder (!%p420_p2), %s1367_s30, 1  ;;  %vm504_vm1 = vcmask (!%p420_p2), 261120  }
   0x6   : > { %423 = sbr.rel (%p420_p2) target bundleno = 2589 (0xa1d), region = 76  ;;  %1437 = vmatprep.subr.bf16.mxu0 (!%p420_p2), %v1585_v1  ;;  %1445 = vmatprep.subr.bf16.mxu1 (!%p420_p2), %v1585_v1  ;;  %v1374_v5 = vld [vmem:[%s1855_s3] ss:$0 sm:$0xff] (!%p420_p2)  ;;  %s1587_s25 = smov (!%p420_p2), 120   ;;  %vm558_vm2 = vcmask (!%p420_p2), 64512   ;;  %vm622_vm3 = vcmask (!%p420_p2), 1043456  }
   0x7   : > { %1438 = vmatpush3.bf16.msra.mxu0 (!%p420_p2), %v1545_v0  ;;  %1441 = vmatprep.mubr.msk.bf16.mxu0 (!%p420_p2), %vm1586_vm0, %v1585_v1  ;;  %s1588_s26 = smov (!%p420_p2), 96   ;;  %s1589_s27 = smov (!%p420_p2), 80   ;;  %vm781_vm4 = vcmask (!%p420_p2), 130112   ;;  %vm897_vm5 = vcmask (!%p420_p2), 195712   ;;  %vm1013_vm6 = vcmask (!%p420_p2), 261312   ;;  %vm1230_vm7 = vcmask (!%p420_p2), 523264  }
   0x8   : > { %1439 = vmatprep.subr.bf16.mxu0 (!%p420_p2), %v1585_v1  ;;  %1447 = vmatprep.mubr.msk.bf16.mxu1 (!%p420_p2), %vm1586_vm0, %v1585_v1  ;;  %s1590_s28 = smov (!%p420_p2), 88   ;;  %s1591_s15 = smov (!%p420_p2), 72  }
   0x9   : > { %s1592_s16 = smov (!%p420_p2), 112   ;;  %s1593_s17 = smov (!%p420_p2), 104  }
   0xa   : > { %s1595_s23 = smov (!%p420_p2), 64   ;;  %s1596_s24 = smov (!%p420_p2), 40  }
   0xb   : > { %1440 = vmatpush3.bf16.msra.mxu0 (!%p420_p2), %v1546_v2  ;;  %s1600_s18 = smov (!%p420_p2), 24  }
   0xc   : > { %1451 = vmatprep.subr.bf16.mxu0 (!%p420_p2), %v1585_v1 }
   0xd   : > { %s1868_s30 = smov (!%p466_p3, %s1367_s30), 1 }
   0xe   : > { %s1372_s19 = sshll.u32 %s1868_s30, 3  ;;  %s472_s21 = scalar_lea.vmem %s1853_s1, %s1868_s30 }
   0xf   : > { %s469_s22 = scalar_lea.vmem %s1852_s0, %s1372_s19  ;;  %v1378_v23 = vld [vmem:[%s472_s21] ss:$0 sm:$0xff] }
  0x10   : > { %v1706_v3 = vld [vmem:[%s469_s22] sm:$0xff]  ;;  %s1594_s22 = smov 56  }
  0x11   : > { %v480_v4 = vpack.c.bf16 %v1706_v3, %v1706_v3 }
  0x13   : > { %1442 = vmatmul.mubr.msk.bf16.vlgmr.msra.gmra.mrb[0].mxu0 %vm504_vm1, %v480_v4 }
  0x14   : > { %1453 = vmatprep.mubr.msk.bf16.mxu0 %vm1586_vm0, %v1585_v1 }
  0xe6   : > { %v542_v6 = vpop.f32.mrb[0].mxu0 }
  0xe7   : > { %v543_v7 = vadd.f32 %v1374_v5, %v542_v6  ;;  %v1443_v8 = vpop.f32.mrb[1].mxu0 }
  0xe8   : > { %v545_v9 = vpop.f32.mrb[2].mxu0 }
  0xe9   : > { %v1716_v10 = vpack.c.bf16 %v543_v7, %v543_v7  ;;  %v1444_v11 = vpop.f32.mrb[3].mxu0 }
  0xeb   : > { %667 = vrot.lane.b32.xlu1 %v1716_v10, %s1587_s25  ;;  %556 = vrot.lane.b32.xlu0 %v1716_v10, %s1588_s26  ;;  %s1597_s25 = smov 48   ;;  %s1598_s26 = smov 8  }
  0xef   : > { %785 = vrot.lane.b32.xlu1 %v1716_v10, %s1589_s27  ;;  %669 = vrot.lane.b32.xlu0 %v1716_v10, %s1590_s28 }
  0xf3   : > { %901 = vrot.lane.b32.xlu1 %v1716_v10, %s1591_s15  ;;  %783 = vrot.lane.b32.xlu0 %v1716_v10, %s1592_s16 }
  0xf7   : > { %899 = vrot.lane.b32.xlu0 %v1716_v10, %s1593_s17  ;;  %s1599_s17 = smov 16  }
 0x15d   : > { %v557_v12 = vpop.permute.xlu0 %556  ;;  %v668_v15 = vpop.permute.xlu1 %667 }
 0x15e   : > { %v563_v13 = vsel %vm558_vm2, %v557_v12, 0 }
 0x15f   : > { %1446 = vmatpush3.bf16.xpose.msra.mxu1 %v563_v13 }
 0x160   : > { %1457 = vmatprep.subr.bf16.mxu1 %v1585_v1 }
 0x161   : > { %v670_v14 = vpop.permute.xlu0 %669  ;;  %v786_v17 = vpop.permute.xlu1 %785 }
 0x162   : > { %v675_v16 = vsel %vm558_vm2, %v670_v14, 0  ;;  %v791_v18 = vsel %vm558_vm2, %v786_v17, 0 }
 0x165   : > { %v902_v19 = vpop.permute.xlu1 %901  ;;  %v784_v20 = vpop.permute.xlu0 %783 }
 0x166   : > { %1448 = vmatmul.mubr.msk.bf16.vlgmr.msra.gmra.mrb[0].mxu1 %vm558_vm2, %v1716_v10  ;;  %v907_v21 = vsel %vm558_vm2, %v902_v19, 0 }
 0x167   : > { %1458 = vmatpush3.bf16.xpose.msra.mxu1 %v675_v16  ;;  %1459 = vmatprep.mubr.msk.bf16.mxu1 %vm1586_vm0, %v1585_v1 }
 0x168   : > { %1469 = vmatprep.subr.bf16.mxu1 %v1585_v1 }
 0x169   : > { %v900_v22 = vpop.permute.xlu0 %899 }
 0x16e   : > { %1460 = vmatmul.mubr.msk.bf16.vlgmr.msra.gmra.mrb[4].mxu1 %vm558_vm2, %v668_v15 }
 0x16f   : > { %1470 = vmatpush3.bf16.xpose.msra.mxu1 %v791_v18  ;;  %1471 = vmatprep.mubr.msk.bf16.mxu1 %vm1586_vm0, %v1585_v1 }
 0x170   : > { %1481 = vmatprep.subr.bf16.mxu1 %v1585_v1 }
 0x176   : > { %1472 = vmatmul.mubr.msk.bf16.vlgmr.msra.gmra.mrb[8].mxu1 %vm558_vm2, %v784_v20 }
 0x177   : > { %1482 = vmatpush3.bf16.xpose.msra.mxu1 %v907_v21  ;;  %1483 = vmatprep.mubr.msk.bf16.mxu1 %vm1586_vm0, %v1585_v1 }
 0x178   : > { %1493 = vmatprep.subr.bf16.mxu1 %v1585_v1 }
 0x17e   : > { %1484 = vmatmul.mubr.msk.bf16.vlgmr.msra.gmra.mrb[12].mxu1 %vm558_vm2, %v900_v22 }
 0x17f   : > { %1497 = vmatprep.mubr.msk.bf16.mxu1 %vm1586_vm0, %v1585_v1 }
 0x239   : > { %v599_v24 = vpop.f32.mrb[0].mxu1 }
 0x23a   : > { %v600_v25 = vadd.f32 %v1378_v23, %v599_v24  ;;  %v1449_v26 = vpop.f32.mrb[1].mxu1 }
 0x23b   : > { %v602_v27 = vpop.f32.mrb[2].mxu1 }
 0x23c   : > { %v1450_v28 = vpop.f32.mrb[3].mxu1  ;;  %v605_v29 = vsel %vm558_vm2, %v600_v25, -inf }
 0x23d   : > { %606 = vmax.xlane.f32.xlu1 %v605_v29 }
 0x241   : > { %v711_v30 = vpop.f32.mrb[4].mxu1 }
 0x242   : > { %v712_v31 = vadd.f32 %v1378_v23, %v711_v30  ;;  %v1461_v32 = vpop.f32.mrb[5].mxu1 }
 0x243   : > { %v714_v33 = vpop.f32.mrb[6].mxu1 }
 0x244   : > { %v1462_v34 = vpop.f32.mrb[7].mxu1  ;;  %v717_v35 = vsel %vm558_vm2, %v712_v31, -inf }
 0x245   : > { %718 = vmax.xlane.f32.xlu0 %v717_v35 }
 0x249   : > { %v827_v36 = vpop.f32.mrb[8].mxu1 }
 0x24a   : > { %v828_v37 = vadd.f32 %v1378_v23, %v827_v36  ;;  %v1473_v38 = vpop.f32.mrb[9].mxu1 }
 0x24b   : > { %v830_v39 = vpop.f32.mrb[10].mxu1  ;;  %v1547_v38 = vld [vmem:[%s1856_s4] sm:$0xff]  }
 0x24c   : > { %v1474_v40 = vpop.f32.mrb[11].mxu1  ;;  %v833_v41 = vsel %vm558_vm2, %v828_v37, -inf  ;;  %1494 = vmatpush3.bf16.msra.mxu1 %v1547_v38  ;;  %v1548_v39 = vld [vmem:[%s1856_s4 + $0x8] sm:$0xff]  }
 0x24d   : > { %834 = vmax.xlane.f32.xlu0 %v833_v41  ;;  %1495 = vmatprep.subr.bf16.mxu1 %v1585_v1 }
 0x250   : > { %1496 = vmatpush3.bf16.msra.mxu1 %v1548_v39 }
 0x251   : > { %v943_v42 = vpop.f32.mrb[12].mxu1  ;;  %1509 = vmatprep.subr.bf16.mxu1 %v1585_v1 }
 0x252   : > { %v944_v43 = vadd.f32 %v1378_v23, %v943_v42  ;;  %v1485_v44 = vpop.f32.mrb[13].mxu1 }
 0x253   : > { %v946_v45 = vpop.f32.mrb[14].mxu1 }
 0x254   : > { %v1486_v46 = vpop.f32.mrb[15].mxu1  ;;  %v949_v47 = vsel %vm558_vm2, %v944_v43, -inf }
 0x255   : > { %950 = vmax.xlane.f32.xlu1 %v949_v47 }
 0x2ca   : > { %v607_v48 = vpop.xlane.xlu1 %606 }
 0x2cb   : > { %v608_v49 = vsub.f32 %v600_v25, %v607_v48 }
 0x2cd   : > { %v609_v50 = vmul.f32 1.442695, %v608_v49 }
 0x2cf   : > { %1555 = vpow2.f32 %v609_v50 }
 0x2d2   : > { %v719_v51 = vpop.xlane.xlu0 %718 }
 0x2d3   : > { %v720_v52 = vsub.f32 %v712_v31, %v719_v51 }
 0x2d5   : > { %v721_v53 = vmul.f32 1.442695, %v720_v52 }
 0x2d7   : > { %1557 = vpow2.f32 %v721_v53  ;;  %v1387_v53 = vld [vmem:[%s1857_s5] ss:$0 sm:$0xff] }
 0x2d9   : > { %v1556_v54 = vpop.eup %1555 }
 0x2da   : > { %v835_v55 = vpop.xlane.xlu0 %834  ;;  %v611_v56 = vsel %vm558_vm2, %v1556_v54, 0.0 }
 0x2db   : > { %v836_v57 = vsub.f32 %v828_v37, %v835_v55  ;;  %612 = vadd.xlane.f32.xlu0 %v611_v56 }
 0x2dd   : > { %v837_v58 = vmul.f32 1.442695, %v836_v57 }
 0x2df   : > { %1559 = vpow2.f32 %v837_v58 }
 0x2e1   : > { %v1558_v59 = vpop.eup %1557 }
 0x2e2   : > { %v723_v60 = vsel %vm558_vm2, %v1558_v59, 0.0  ;;  %v951_v63 = vpop.xlane.xlu1 %950 }
 0x2e3   : > { %724 = vadd.xlane.f32.xlu1 %v723_v60  ;;  %v952_v0 = vsub.f32 %v944_v43, %v951_v63 }
 0x2e5   : > { %v953_v2 = vmul.f32 1.442695, %v952_v0 }
 0x2e7   : > { %1561 = vpow2.f32 %v953_v2 }
 0x2e9   : > { %v1560_v61 = vpop.eup %1559 }
 0x2ea   : > { %v839_v62 = vsel %vm558_vm2, %v1560_v61, 0.0 }
 0x2eb   : > { %840 = vadd.xlane.f32.xlu0 %v839_v62 }
 0x2f1   : > { %v1562_v4 = vpop.eup %1561 }
 0x2f2   : > { %v955_v5 = vsel %vm558_vm2, %v1562_v4, 0.0 }
 0x2f4   : > { %729 = vrot.lane.b32.xlu1 %v1716_v10, %s1594_s22  ;;  %s476_s22 = scalar_lea.vmem %s1866_s14, %s1372_s19 }
 0x301   : > { %617 = vrot.lane.b32.xlu0 %v1716_v10, %s1595_s23 }
 0x305   : > { %961 = vrot.lane.b32.xlu0 %v1716_v10, %s1596_s24 }
 0x318   : > { %956 = vadd.xlane.f32.xlu1 %v955_v5 }
 0x329   : > { %845 = vrot.lane.b32.xlu1 %v1716_v10, %s1597_s25 }
 0x368   : > { %v613_v6 = vpop.xlane.xlu0 %612 }
 0x369   : > { %1563 = vrcp.f32 %v613_v6 }
 0x370   : > { %v725_v7 = vpop.xlane.xlu1 %724 }
 0x371   : > { %1565 = vrcp.f32 %v725_v7 }
 0x373   : > { %v1564_v8 = vpop.eup %1563 }
 0x374   : > { %v615_v11 = vmul.f32 %v1564_v8, %v1556_v54  ;;  %v730_v14 = vpop.permute.xlu1 %729 }
 0x375   : > { %v735_v17 = vsel %vm622_vm3, %v730_v14, 0 }
 0x376   : > { %v616_v15 = vpack.c.bf16 %v615_v11, %v615_v11 }
 0x378   : > { %v841_v9 = vpop.xlane.xlu0 %840 }
 0x379   : > { %1567 = vrcp.f32 %v841_v9  ;;  %v1391_v9 = vld [vmem:[%s1858_s6] ss:$0 sm:$0xff] }
 0x37b   : > { %v1566_v16 = vpop.eup %1565 }
 0x37c   : > { %v618_v12 = vpop.permute.xlu0 %617  ;;  %v727_v10 = vmul.f32 %v1566_v16, %v1558_v59  ;;  %v1551_v16 = vld [vmem:[%s1862_s10] sm:$0xff]  }
 0x37d   : > { %v624_v13 = vsel %vm622_vm3, %v618_v12, 0  ;;  %v1392_v12 = vld [vmem:[%s1859_s7] ss:$0 sm:$0xff] }
 0x37e   : > { %1452 = vmatpush3.bf16.msra.mxu0 %v624_v13  ;;  %v728_v18 = vpack.c.bf16 %v727_v10, %v727_v10  ;;  %v1553_v10 = vld [vmem:[%s1862_s10 + $0x10] sm:$0xff]  }
 0x37f   : > { %1463 = vmatprep.subr.bf16.mxu0 %v1585_v1 }
 0x380   : > { %v962_v24 = vpop.permute.xlu0 %961 }
 0x381   : > { %1454 = vmatmul.mubr.msk.bf16.vlgmr.msra.gmra.mrb[4].mxu0 %vm558_vm2, %v616_v15  ;;  %v967_v26 = vsel %vm622_vm3, %v962_v24, 0 }
 0x382   : > { %1464 = vmatpush3.bf16.msra.mxu0 %v735_v17  ;;  %1465 = vmatprep.mubr.msk.bf16.mxu0 %vm1586_vm0, %v1585_v1  ;;  %v1552_v17 = vld [vmem:[%s1862_s10 + $0x8] sm:$0xff]  }
 0x383   : > { %1475 = vmatprep.subr.bf16.mxu0 %v1585_v1  ;;  %v1568_v19 = vpop.eup %1567 }
 0x384   : > { %v843_v21 = vmul.f32 %v1568_v19, %v1560_v61  ;;  %v1393_v19 = vld [vmem:[%s1861_s9] ss:$0 sm:$0xff] }
 0x386   : > { %v844_v25 = vpack.c.bf16 %v843_v21, %v843_v21 }
 0x389   : > { %1466 = vmatmul.mubr.msk.bf16.vlgmr.msra.gmra.mrb[8].mxu0 %vm558_vm2, %v728_v18  ;;  %v1554_v18 = vld [vmem:[%s1862_s10 + $0x18] sm:$0xff]  }
 0x38a   : > { %1477 = vmatprep.mubr.msk.bf16.mxu0 %vm1586_vm0, %v1585_v1 }
 0x3a5   : > { %v957_v20 = vpop.xlane.xlu1 %956 }
 0x3a6   : > { %1569 = vrcp.f32 %v957_v20 }
 0x3a9   : > { %v846_v22 = vpop.permute.xlu1 %845 }
 0x3aa   : > { %v851_v23 = vsel %vm622_vm3, %v846_v22, 0 }
 0x3ab   : > { %1476 = vmatpush3.bf16.msra.mxu0 %v851_v23 }
 0x3ac   : > { %1487 = vmatprep.subr.bf16.mxu0 %v1585_v1 }
 0x3ae   : > { %1478 = vmatmul.mubr.msk.bf16.vlgmr.msra.gmra.mrb[12].mxu0 %vm558_vm2, %v844_v25 }
 0x3af   : > { %1488 = vmatpush3.bf16.msra.mxu0 %v967_v26  ;;  %1489 = vmatprep.mubr.msk.bf16.mxu0 %vm1586_vm0, %v1585_v1 }
 0x3b0   : > { %v1570_v27 = vpop.eup %1569  ;;  %1501 = vmatprep.subr.bf16.mxu0 %v1585_v1 }
 0x3b1   : > { %v959_v28 = vmul.f32 %v1570_v27, %v1562_v4  ;;  %v1549_v4 = vld [vmem:[%s1860_s8] sm:$0xff]  }
 0x3b3   : > { %v960_v29 = vpack.c.bf16 %v959_v28, %v959_v28 }
 0x3b6   : > { %1490 = vmatmul.mubr.msk.bf16.vlgmr.msra.gmra.mrb[16].mxu0 %vm558_vm2, %v960_v29 }
 0x3b7   : > { %1505 = vmatprep.mubr.msk.bf16.mxu0 %vm1586_vm0, %v1585_v1  ;;  %1502 = vmatpush3.bf16.msra.mxu0 %v1549_v4 }
 0x3b8   : > { %1503 = vmatprep.subr.bf16.mxu0 %v1585_v1 }
 0x454   : > { %v660_v30 = vpop.f32.mrb[4].mxu0 }
 0x455   : > { %666 = vst.msk [vmem:[#allocation2] sm:$0xff] %vm558_vm2, %v660_v30  ;;  %v1455_v31 = vpop.f32.mrb[5].mxu0 }
 0x456   : > { %v663_v32 = vpop.f32.mrb[6].mxu0 }
 0x457   : > { %v1456_v33 = vpop.f32.mrb[7].mxu0 }
 0x45c   : > { %v771_v34 = vpop.f32.mrb[8].mxu0 }
 0x45d   : > { %778 = vrot.lane.b32.xlu1 %v771_v34, %s1598_s26  ;;  %v1467_v35 = vpop.f32.mrb[9].mxu0  ;;  %v1397_v34 = vld [vmem:[%s1863_s11] ss:$0 sm:$0xff] }
 0x45e   : > { %v774_v36 = vpop.f32.mrb[10].mxu0 }
 0x45f   : > { %v1468_v37 = vpop.f32.mrb[11].mxu0 }
 0x481   : > { %v887_v40 = vpop.f32.mrb[12].mxu0 }
 0x482   : > { %894 = vrot.lane.b32.xlu0 %v887_v40, %s1599_s17  ;;  %v1479_v41 = vpop.f32.mrb[13].mxu0 }
 0x483   : > { %v890_v42 = vpop.f32.mrb[14].mxu0 }
 0x484   : > { %v1480_v43 = vpop.f32.mrb[15].mxu0 }
 0x489   : > { %v1003_v44 = vpop.f32.mrb[16].mxu0 }
 0x48a   : > { %1010 = vrot.lane.b32.xlu1 %v1003_v44, %s1600_s18  ;;  %v1491_v45 = vpop.f32.mrb[17].mxu0 }
 0x48b   : > { %v1006_v46 = vpop.f32.mrb[18].mxu0 }
 0x48c   : > { %v1492_v47 = vpop.f32.mrb[19].mxu0 }
 0x4cf   : > { %v779_v48 = vpop.permute.xlu1 %778 }
 0x4d0   : > { %782 = vst.msk [vmem:[#allocation2] sm:$0xff] %vm781_vm4, %v779_v48 }
 0x4f4   : > { %v895_v49 = vpop.permute.xlu0 %894 }
 0x4f5   : > { %898 = vst.msk [vmem:[#allocation2] sm:$0xff] %vm897_vm5, %v895_v49 }
 0x4fc   : > { %v1011_v50 = vpop.permute.xlu1 %1010 }
 0x4fd   : > { %1014 = vst.msk [vmem:[#allocation2] sm:$0xff] %vm1013_vm6, %v1011_v50 }
 0x504   : > { %v1015_v51 = vld [vmem:[#allocation2] sm:$0xff] }
 0x505   : > { %v1016_v52 = vpack.c.bf16 %v1015_v51, %v1015_v51  ;;  %v1403_v51 = vld [vmem:[%s1864_s12] ss:$0 sm:$0xff] }
 0x507   : > { %1498 = vmatmul.mubr.msk.bf16.vlgmr.msra.gmra.mrb[16].mxu1 %vm504_vm1, %v1016_v52 }
 0x508   : > { %1517 = vmatprep.mubr.msk.bf16.mxu1 %vm1586_vm0, %v1585_v1  ;;  %1510 = vmatpush3.bf16.msra.mxu1 %v1551_v16 }
 0x509   : > { %1511 = vmatprep.subr.bf16.mxu1 %v1585_v1 }
 0x50c   : > { %1512 = vmatpush3.bf16.msra.mxu1 %v1552_v17 }
 0x50d   : > { %1513 = vmatprep.subr.bf16.mxu1 %v1585_v1 }
 0x510   : > { %1514 = vmatpush3.bf16.msra.mxu1 %v1553_v10 }
 0x511   : > { %1515 = vmatprep.subr.bf16.mxu1 %v1585_v1 }
 0x514   : > { %1516 = vmatpush3.bf16.msra.mxu1 %v1554_v18 }
 0x5da   : > { %v1077_v54 = vpop.f32.mrb[16].mxu1 }
 0x5db   : > { %v1078_v55 = vadd.f32 %v1387_v53, %v1077_v54  ;;  %v1499_v56 = vpop.f32.mrb[17].mxu1  ;;  %v1404_v53 = vld [vmem:[%s1865_s13] ss:$0 sm:$0xff] }
 0x5dc   : > { %v1080_v57 = vpop.f32.mrb[18].mxu1 }
 0x5dd   : > { %v1500_v58 = vpop.f32.mrb[19].mxu1  ;;  %v1083_v59 = vadd.f32 %v1078_v55, %v1706_v3  ;;  %v1550_v3 = vld [vmem:[%s1860_s8 + $0x8] sm:$0xff]  }
 0x5de   : > { %1504 = vmatpush3.bf16.msra.mxu0 %v1550_v3 }
 0x5df   : > { %v1086_v60 = vsel %vm504_vm1, %v1083_v59, 0.0 }
 0x5e0   : > { %1087 = vadd.xlane.f32.xlu0 %v1086_v60 }
 0x66d   : > { %v1088_v61 = vpop.xlane.xlu0 %1087 }
 0x66e   : > { %v1090_v62 = vmul.f32 0.03125, %v1088_v61 }
 0x670   : > { %v1091_v63 = vsub.f32 %v1083_v59, %v1090_v62 }
 0x672   : > { %v1092_v0 = vmul.f32 %v1091_v63, %v1091_v63 }
 0x674   : > { %v1093_v2 = vsel %vm504_vm1, %v1092_v0, 0.0 }
 0x675   : > { %1094 = vadd.xlane.f32.xlu1 %v1093_v2 }
 0x702   : > { %v1095_v5 = vpop.xlane.xlu1 %1094 }
 0x703   : > { %v1096_v6 = vmul.f32 0.03125, %v1095_v5 }
 0x705   : > { %v1097_v7 = vadd.f32 1e-12, %v1096_v6 }
 0x707   : > { %1571 = vrsqrt.f32 %v1097_v7 }
 0x711   : > { %v1572_v8 = vpop.eup %1571 }
 0x712   : > { %v1099_v11 = vmul.f32 %v1572_v8, %v1091_v63 }
 0x714   : > { %v1106_v13 = vmul.f32 %v1391_v9, %v1099_v11 }
 0x716   : > { %v1113_v14 = vadd.f32 %v1392_v12, %v1106_v13 }
 0x718   : > { %v1114_v15 = vpack.c.bf16 %v1113_v14, %v1113_v14 }
 0x71a   : > { %1506 = vmatmul.mubr.msk.bf16.vlgmr.msra.gmra.mrb[20].mxu0 %vm504_vm1, %v1114_v15 }
 0x7ed   : > { %v1175_v20 = vpop.f32.mrb[20].mxu0 }
 0x7ee   : > { %v1176_v21 = vadd.f32 %v1393_v19, %v1175_v20  ;;  %v1507_v22 = vpop.f32.mrb[21].mxu0 }
 0x7ef   : > { %v1178_v23 = vpop.f32.mrb[22].mxu0 }
 0x7f0   : > { %v1182_v24 = vmul.f32 0.044715, %v1176_v21  ;;  %v1508_v25 = vpop.f32.mrb[23].mxu0  ;;  %v1181_v31 = vmul.f32 0.5, %v1176_v21 }
 0x7f2   : > { %v1183_v26 = vmul.f32 %v1182_v24, %v1176_v21 }
 0x7f4   : > { %v1184_v27 = vmul.f32 %v1183_v26, %v1176_v21 }
 0x7f6   : > { %v1185_v28 = vadd.f32 %v1184_v27, %v1176_v21 }
 0x7f8   : > { %v1186_v29 = vmul.f32 0.7978846, %v1185_v28 }
 0x7fa   : > { %1573 = vtanh.f32 %v1186_v29 }
 0x804   : > { %v1574_v30 = vpop.eup %1573 }
 0x805   : > { %v1188_v32 = vadd.f32 1.0, %v1574_v30 }
 0x807   : > { %v1189_v1 = vmul.f32 %v1188_v32, %v1181_v31 }
 0x809   : > { %v1190_v33 = vpack.c.bf16 %v1189_v1, %v1189_v1 }
 0x80b   : > { %1518 = vmatmul.mubr.msk.bf16.vlgmr.msra.gmra.mrb[20].mxu1 %vm1230_vm7, %v1190_v33 }
 0x8de   : > { %v1268_v35 = vpop.f32.mrb[20].mxu1 }
 0x8df   : > { %v1269_v36 = vadd.f32 %v1397_v34, %v1268_v35  ;;  %v1519_v37 = vpop.f32.mrb[21].mxu1 }
 0x8e0   : > { %v1271_v38 = vpop.f32.mrb[22].mxu1 }
 0x8e1   : > { %v1520_v39 = vpop.f32.mrb[23].mxu1  ;;  %v1274_v40 = vadd.f32 %v1269_v36, %v1113_v14 }
 0x8e3   : > { %v1277_v41 = vsel %vm504_vm1, %v1274_v40, 0.0 }
 0x8e4   : > { %1278 = vadd.xlane.f32.xlu0 %v1277_v41 }
 0x971   : > { %v1279_v42 = vpop.xlane.xlu0 %1278 }
 0x972   : > { %v1280_v43 = vmul.f32 0.03125, %v1279_v42 }
 0x974   : > { %v1281_v44 = vsub.f32 %v1274_v40, %v1280_v43 }
 0x976   : > { %v1282_v45 = vmul.f32 %v1281_v44, %v1281_v44 }
 0x978   : > { %v1283_v46 = vsel %vm504_vm1, %v1282_v45, 0.0 }
 0x979   : > { %1284 = vadd.xlane.f32.xlu0 %v1283_v46 }
 0xa06   : > { %v1285_v47 = vpop.xlane.xlu0 %1284 }
 0xa07   : > { %v1286_v48 = vmul.f32 0.03125, %v1285_v47 }
 0xa09   : > { %v1287_v49 = vadd.f32 1e-12, %v1286_v48 }
 0xa0b   : > { %1575 = vrsqrt.f32 %v1287_v49 }
 0xa15   : > { %v1576_v50 = vpop.eup %1575 }
 0xa16   : > { %v1289_v52 = vmul.f32 %v1576_v50, %v1281_v44 }
 0xa18   : > { %v1296_v54 = vmul.f32 %v1403_v51, %v1289_v52 }
 0xa1a   : > { %v1303_v55 = vadd.f32 %v1404_v53, %v1296_v54 }
 0xa1c   : > { %1304 = vst.msk [vmem:[%s476_s22] sm:$0xff] %vm504_vm1, %v1303_v55 }
 0xa1d PF: > { %s24_s29 = sadd.s32 1, %s1583_s29  }
 0xa1e   : > { %p21_p4 = scmp.ge.s32.totalorder %s24_s29, 4  }
 0xa20   :  { %23 = sbr.rel (!%p21_p4) target bundleno = 1 (0x1), region = 109 }

</bundles_post_ra>
